<compile_context>
chip_gen: v6e
topology: v6e:2x2x1
jax: 0.10.0
libtpu: 0.0.40
codegen_flags: <defaults>
</compile_context>

<pallas_src>
import functools

import jax
import jax.numpy as jnp
from jax import lax
from jax.experimental import pallas as pl
from jax.experimental.pallas import tpu as pltpu

EPS = 1e-5


# ----------------------------------------------------------------------------
# Fused kernel: GroupNorm -> ReLU -> AvgPool2d(2) -> Conv1x1, for one block of
# samples.  The input arrives pre-deinterleaved into its four 2x2 pooling
# phases, so pooling is a plain quadrant mean on the VPU.
#   x block    : (block_n, 4, C, HWo)
#   gamma/beta : (C, 1)
#   wT         : (Cout, C)      conv1x1 weight, transposed for channel-major
#   bias       : (Cout, 1)
#   out block  : (block_n, Cout, HWo)
#   hp scratch : (C, block_n*HWo)  pooled, normalized activations (VMEM)
# ----------------------------------------------------------------------------
def _make_kernel(num_groups: int):
    def kernel(x_ref, gamma_ref, beta_ref, wt_ref, bias_ref, o_ref, hp_ref):
        bn, _, C, HWo = x_ref.shape
        cg = C // num_groups
        inv_cnt = 1.0 / float(4 * cg * HWo)          # == 1 / (cg * H * W)

        for b in range(bn):                          # static unroll (bn is tiny)
            for gi in range(num_groups):             # static unroll over groups
                lo = gi * cg
                # Four 2x2 pooling-phase quadrants of this group's channels.
                q0 = x_ref[b, 0, lo:lo + cg, :]      # (cg, HWo)
                q1 = x_ref[b, 1, lo:lo + cg, :]
                q2 = x_ref[b, 2, lo:lo + cg, :]
                q3 = x_ref[b, 3, lo:lo + cg, :]

                # GroupNorm stats, two-pass (better numerics than E[x^2]-E[x]^2).
                m = (jnp.sum(q0) + jnp.sum(q1) + jnp.sum(q2) + jnp.sum(q3)) * inv_cnt
                d0, d1, d2, d3 = q0 - m, q1 - m, q2 - m, q3 - m
                ss = (jnp.sum(d0 * d0) + jnp.sum(d1 * d1) +
                      jnp.sum(d2 * d2) + jnp.sum(d3 * d3))
                inv = lax.rsqrt(ss * inv_cnt + EPS)

                scale = gamma_ref[lo:lo + cg, :] * inv           # (cg, 1)
                shift = beta_ref[lo:lo + cg, :]                  # (cg, 1)

                # Normalize + affine + ReLU (VPU), then AvgPool2d(2) == mean of
                # the four quadrants (VPU adds, no MXU, no strided access).
                h0 = jnp.maximum(d0 * scale + shift, 0.0)
                h1 = jnp.maximum(d1 * scale + shift, 0.0)
                h2 = jnp.maximum(d2 * scale + shift, 0.0)
                h3 = jnp.maximum(d3 * scale + shift, 0.0)
                hp_ref[lo:lo + cg, b * HWo:(b + 1) * HWo] = (h0 + h1 + h2 + h3) * 0.25

        # 1x1 conv on the pooled maps: ONE batched MXU matmul for the whole block.
        y = (jnp.dot(wt_ref[...], hp_ref[...],
                     preferred_element_type=jnp.float32) + bias_ref[...])
        for b in range(bn):
            o_ref[b] = y[:, b * HWo:(b + 1) * HWo]

    return kernel


def _round_up(x, m):
    return (x + m - 1) // m * m


@functools.partial(jax.jit, static_argnames=("num_groups",))
def transition_layer_forward(x_nchw, params, *, num_groups):
    """GroupNorm -> ReLU -> Conv1x1(C -> C//2) -> AvgPool2d(2).

    x_nchw: (N, C, H, W) float32 (PyTorch layout).  Returns (N, C//2, H//2, W//2).
    """
    N, C, H, W = x_nchw.shape
    Cout = C // 2
    Ho, Wo = H // 2, W // 2
    HWo = Ho * Wo

    # <= 2 grid steps (one per v7x TensorCore); ceil(N/2) samples per block so
    # single-TC chips (v5e/v6e) pay at most one extra ~0.35us pipeline step.
    num_blocks = 2 if N >= 2 else 1
    block_n = -(-N // num_blocks)
    n_pad = num_blocks * block_n

    x = x_nchw.astype(jnp.float32)
    if n_pad != N:
        x = jnp.concatenate(
            [x, jnp.zeros((n_pad - N, C, H, W), jnp.float32)], axis=0)

    # Deinterleave the 2x2 pooling phases up front (single fused XLA transpose;
    # this replaces both NCHW<->NHWC transposes of the previous version).
    xq = x.reshape(n_pad, C, Ho, 2, Wo, 2)
    xq = jnp.transpose(xq, (0, 3, 5, 1, 2, 4)).reshape(n_pad, 4, C, HWo)

    gamma = params["gamma"].reshape(C, 1).astype(jnp.float32)
    beta = params["beta"].reshape(C, 1).astype(jnp.float32)
    wt = params["w"].astype(jnp.float32).T                      # (Cout, C)
    bias = params["b"].reshape(Cout, 1).astype(jnp.float32)

    # Right-size the scoped-VMEM request from the actual (padded, double-
    # buffered) block footprint; cap well below v7x's 64 MiB physical VMEM.
    f32 = 4
    in_blk = block_n * 4 * _round_up(C, 8) * _round_up(HWo, 128) * f32
    out_blk = block_n * _round_up(Cout, 8) * _round_up(HWo, 128) * f32
    par_blk = (2 * _round_up(C, 8) * 128
               + _round_up(Cout, 8) * _round_up(C, 128)
               + _round_up(Cout, 8) * 128) * f32
    scr_blk = _round_up(C, 8) * _round_up(block_n * HWo, 128) * f32
    vmem_limit = int(min(max(4 * (2 * (in_blk + out_blk + par_blk) + scr_blk),
                             4 * 1024 * 1024),
                         32 * 1024 * 1024))

    out = pl.pallas_call(
        _make_kernel(num_groups),
        out_shape=jax.ShapeDtypeStruct((n_pad, Cout, HWo), jnp.float32),
        grid=(num_blocks,),
        in_specs=[
            pl.BlockSpec((block_n, 4, C, HWo), lambda i: (i, 0, 0, 0)),  # activations
            pl.BlockSpec((C, 1), lambda i: (0, 0)),        # gamma (grid-invariant)
            pl.BlockSpec((C, 1), lambda i: (0, 0)),        # beta
            pl.BlockSpec((Cout, C), lambda i: (0, 0)),     # conv1x1 weight^T
            pl.BlockSpec((Cout, 1), lambda i: (0, 0)),     # conv1x1 bias
        ],
        out_specs=pl.BlockSpec((block_n, Cout, HWo), lambda i: (i, 0, 0)),
        scratch_shapes=[pltpu.VMEM((C, block_n * HWo), jnp.float32)],
        compiler_params=pltpu.CompilerParams(
            dimension_semantics=("parallel",),
            vmem_limit_bytes=vmem_limit,
        ),
    )(xq, gamma, beta, wt, bias)

    # Free (metadata-only) reshape back to NCHW; drop any batch padding.
    return out[:N].reshape(N, Cout, Ho, Wo)


# ----------------------------------------------------------------------------
# Pure-JAX reference (PyTorch op order: GN -> ReLU -> Conv1x1 -> AvgPool2d(2))
# ----------------------------------------------------------------------------
def ref_transition(x_nchw, params, num_groups):
    x = jnp.transpose(x_nchw, (0, 2, 3, 1)).astype(jnp.float32)   # NHWC
    N, H, W, C = x.shape
    g = num_groups
    xg = x.reshape(N, H, W, g, C // g)
    mean = xg.mean(axis=(1, 2, 4), keepdims=True)
    var = ((xg - mean) ** 2).mean(axis=(1, 2, 4), keepdims=True)
    y = ((xg - mean) / jnp.sqrt(var + EPS)).reshape(N, H, W, C)
    y = jnp.maximum(y * params["gamma"] + params["beta"], 0.0)
    y = jnp.einsum("nhwc,cf->nhwf", y, params["w"]) + params["b"]
    Ho, Wo = H // 2, W // 2
    y = y.reshape(N, Ho, 2, Wo, 2, -1).mean(axis=(2, 4))
    return jnp.transpose(y, (0, 3, 1, 2))                          # NCHW


if __name__ == "__main__":
    # TransitionLayer(inChannels=16, numGroups=4): outChannels = 8
    N, C, H, W = 2, 16, 16, 16
    NUM_GROUPS = 4
    COUT = C // 2

    key = jax.random.PRNGKey(0)
    kg, kb, kw, kbi, kx = jax.random.split(key, 5)
    params = {
        "gamma": 1.0 + 0.1 * jax.random.normal(kg, (C,), jnp.float32),
        "beta": 0.1 * jax.random.normal(kb, (C,), jnp.float32),
        "w": 0.1 * jax.random.normal(kw, (C, COUT), jnp.float32),   # (Cin, Cout)
        "b": 0.1 * jax.random.normal(kbi, (COUT,), jnp.float32),
    }
    x = jax.random.normal(kx, (N, C, H, W), jnp.float32)            # NCHW like PyTorch

    out = jax.block_until_ready(
        transition_layer_forward(x, params, num_groups=NUM_GROUPS))
    assert out.shape == (N, COUT, H // 2, W // 2), out.shape

    ref = jax.block_until_ready(ref_transition(x, params, NUM_GROUPS))
    assert jnp.allclose(out, ref, atol=1e-4, rtol=1e-4), float(
        jnp.max(jnp.abs(out - ref)))

    print("KERNEL_OK")
</pallas_src>

<mosaic_0001>
module attributes {stable_mosaic.version = 11 : i64} {
  func.func @kernel(%arg0: i32, %arg1: memref<1x4x16x64xf32, #tpu.memory_space<vmem>>, %arg2: memref<16x1xf32, #tpu.memory_space<vmem>>, %arg3: memref<16x1xf32, #tpu.memory_space<vmem>>, %arg4: memref<8x16xf32, #tpu.memory_space<vmem>>, %arg5: memref<8x1xf32, #tpu.memory_space<vmem>>, %arg6: memref<1x8x64xf32, #tpu.memory_space<vmem>>, %arg7: memref<16x64xf32, #tpu.memory_space<vmem>>) attributes {dimension_semantics = [#tpu.dimension_semantics<parallel>], iteration_bounds = array<i64: 2>, scalar_prefetch = 0 : i64, scratch_operands = 1 : i64, tpu.core_type = #tpu.core_type<tc>, window_params = [{transform_indices = @transform_0, window_bounds = array<i64: 1, 4, 16, 64>}, {pipeline_mode = #tpu.pipeline_mode<synchronous>, transform_indices = @transform_1, window_bounds = array<i64: 16, 1>}, {pipeline_mode = #tpu.pipeline_mode<synchronous>, transform_indices = @transform_2, window_bounds = array<i64: 16, 1>}, {pipeline_mode = #tpu.pipeline_mode<synchronous>, transform_indices = @transform_3, window_bounds = array<i64: 8, 16>}, {pipeline_mode = #tpu.pipeline_mode<synchronous>, transform_indices = @transform_4, window_bounds = array<i64: 8, 1>}, {transform_indices = @transform_5, window_bounds = array<i64: 1, 8, 64>}]} {
    %c0 = arith.constant 0 : index
    %c0_0 = arith.constant 0 : index
    %c0_1 = arith.constant 0 : index
    %c0_2 = arith.constant 0 : index
    %0 = vector.load %arg1[%c0, %c0_0, %c0_1, %c0_2] : memref<1x4x16x64xf32, #tpu.memory_space<vmem>>, vector<1x1x4x64xf32>
    %1 = vector.shape_cast %0 : vector<1x1x4x64xf32> to vector<4x64xf32>
    %c0_3 = arith.constant 0 : index
    %c1 = arith.constant 1 : index
    %c0_4 = arith.constant 0 : index
    %c0_5 = arith.constant 0 : index
    %2 = vector.load %arg1[%c0_3, %c1, %c0_4, %c0_5] : memref<1x4x16x64xf32, #tpu.memory_space<vmem>>, vector<1x1x4x64xf32>
    %3 = vector.shape_cast %2 : vector<1x1x4x64xf32> to vector<4x64xf32>
    %c0_6 = arith.constant 0 : index
    %c2 = arith.constant 2 : index
    %c0_7 = arith.constant 0 : index
    %c0_8 = arith.constant 0 : index
    %4 = vector.load %arg1[%c0_6, %c2, %c0_7, %c0_8] : memref<1x4x16x64xf32, #tpu.memory_space<vmem>>, vector<1x1x4x64xf32>
    %5 = vector.shape_cast %4 : vector<1x1x4x64xf32> to vector<4x64xf32>
    %c0_9 = arith.constant 0 : index
    %c3 = arith.constant 3 : index
    %c0_10 = arith.constant 0 : index
    %c0_11 = arith.constant 0 : index
    %6 = vector.load %arg1[%c0_9, %c3, %c0_10, %c0_11] : memref<1x4x16x64xf32, #tpu.memory_space<vmem>>, vector<1x1x4x64xf32>
    %7 = vector.shape_cast %6 : vector<1x1x4x64xf32> to vector<4x64xf32>
    %8 = vector.shape_cast %1 : vector<4x64xf32> to vector<1x4x64xf32>
    %cst = arith.constant dense<0.000000e+00> : vector<1xf32>
    %9 = vector.multi_reduction <add>, %8, %cst [1, 2] : vector<1x4x64xf32> to vector<1xf32>
    %10 = vector.shape_cast %9 : vector<1xf32> to vector<1x1x1xf32>
    %11 = vector.extract %10[0, 0, 0] : f32 from vector<1x1x1xf32>
    %12 = vector.shape_cast %3 : vector<4x64xf32> to vector<1x4x64xf32>
    %cst_12 = arith.constant dense<0.000000e+00> : vector<1xf32>
    %13 = vector.multi_reduction <add>, %12, %cst_12 [1, 2] : vector<1x4x64xf32> to vector<1xf32>
    %14 = vector.shape_cast %13 : vector<1xf32> to vector<1x1x1xf32>
    %15 = vector.extract %14[0, 0, 0] : f32 from vector<1x1x1xf32>
    %16 = arith.addf %11, %15 : f32
    %17 = vector.shape_cast %5 : vector<4x64xf32> to vector<1x4x64xf32>
    %cst_13 = arith.constant dense<0.000000e+00> : vector<1xf32>
    %18 = vector.multi_reduction <add>, %17, %cst_13 [1, 2] : vector<1x4x64xf32> to vector<1xf32>
    %19 = vector.shape_cast %18 : vector<1xf32> to vector<1x1x1xf32>
    %20 = vector.extract %19[0, 0, 0] : f32 from vector<1x1x1xf32>
    %21 = arith.addf %16, %20 : f32
    %22 = vector.shape_cast %7 : vector<4x64xf32> to vector<1x4x64xf32>
    %cst_14 = arith.constant dense<0.000000e+00> : vector<1xf32>
    %23 = vector.multi_reduction <add>, %22, %cst_14 [1, 2] : vector<1x4x64xf32> to vector<1xf32>
    %24 = vector.shape_cast %23 : vector<1xf32> to vector<1x1x1xf32>
    %25 = vector.extract %24[0, 0, 0] : f32 from vector<1x1x1xf32>
    %26 = arith.addf %21, %25 : f32
    %cst_15 = arith.constant 9.765625E-4 : f32
    %27 = arith.mulf %26, %cst_15 : f32
    %28 = vector.broadcast %27 : f32 to vector<4x64xf32>
    %29 = arith.subf %1, %28 : vector<4x64xf32>
    %30 = vector.broadcast %27 : f32 to vector<4x64xf32>
    %31 = arith.subf %3, %30 : vector<4x64xf32>
    %32 = vector.broadcast %27 : f32 to vector<4x64xf32>
    %33 = arith.subf %5, %32 : vector<4x64xf32>
    %34 = vector.broadcast %27 : f32 to vector<4x64xf32>
    %35 = arith.subf %7, %34 : vector<4x64xf32>
    %36 = arith.mulf %29, %29 : vector<4x64xf32>
    %37 = vector.shape_cast %36 : vector<4x64xf32> to vector<1x4x64xf32>
    %cst_16 = arith.constant dense<0.000000e+00> : vector<1xf32>
    %38 = vector.multi_reduction <add>, %37, %cst_16 [1, 2] : vector<1x4x64xf32> to vector<1xf32>
    %39 = vector.shape_cast %38 : vector<1xf32> to vector<1x1x1xf32>
    %40 = vector.extract %39[0, 0, 0] : f32 from vector<1x1x1xf32>
    %41 = arith.mulf %31, %31 : vector<4x64xf32>
    %42 = vector.shape_cast %41 : vector<4x64xf32> to vector<1x4x64xf32>
    %cst_17 = arith.constant dense<0.000000e+00> : vector<1xf32>
    %43 = vector.multi_reduction <add>, %42, %cst_17 [1, 2] : vector<1x4x64xf32> to vector<1xf32>
    %44 = vector.shape_cast %43 : vector<1xf32> to vector<1x1x1xf32>
    %45 = vector.extract %44[0, 0, 0] : f32 from vector<1x1x1xf32>
    %46 = arith.addf %40, %45 : f32
    %47 = arith.mulf %33, %33 : vector<4x64xf32>
    %48 = vector.shape_cast %47 : vector<4x64xf32> to vector<1x4x64xf32>
    %cst_18 = arith.constant dense<0.000000e+00> : vector<1xf32>
    %49 = vector.multi_reduction <add>, %48, %cst_18 [1, 2] : vector<1x4x64xf32> to vector<1xf32>
    %50 = vector.shape_cast %49 : vector<1xf32> to vector<1x1x1xf32>
    %51 = vector.extract %50[0, 0, 0] : f32 from vector<1x1x1xf32>
    %52 = arith.addf %46, %51 : f32
    %53 = arith.mulf %35, %35 : vector<4x64xf32>
    %54 = vector.shape_cast %53 : vector<4x64xf32> to vector<1x4x64xf32>
    %cst_19 = arith.constant dense<0.000000e+00> : vector<1xf32>
    %55 = vector.multi_reduction <add>, %54, %cst_19 [1, 2] : vector<1x4x64xf32> to vector<1xf32>
    %56 = vector.shape_cast %55 : vector<1xf32> to vector<1x1x1xf32>
    %57 = vector.extract %56[0, 0, 0] : f32 from vector<1x1x1xf32>
    %58 = arith.addf %52, %57 : f32
    %cst_20 = arith.constant 9.765625E-4 : f32
    %59 = arith.mulf %58, %cst_20 : f32
    %cst_21 = arith.constant 9.99999974E-6 : f32
    %60 = arith.addf %59, %cst_21 : f32
    %61 = math.rsqrt %60 : f32
    %c0_22 = arith.constant 0 : index
    %c0_23 = arith.constant 0 : index
    %62 = vector.load %arg2[%c0_22, %c0_23] : memref<16x1xf32, #tpu.memory_space<vmem>>, vector<4x1xf32>
    %63 = vector.broadcast %61 : f32 to vector<4x1xf32>
    %64 = arith.mulf %62, %63 : vector<4x1xf32>
    %c0_24 = arith.constant 0 : index
    %c0_25 = arith.constant 0 : index
    %65 = vector.load %arg3[%c0_24, %c0_25] : memref<16x1xf32, #tpu.memory_space<vmem>>, vector<4x1xf32>
    %66 = vector.broadcast %64 : vector<4x1xf32> to vector<4x64xf32>
    %67 = arith.mulf %29, %66 : vector<4x64xf32>
    %68 = vector.broadcast %65 : vector<4x1xf32> to vector<4x64xf32>
    %69 = arith.addf %67, %68 : vector<4x64xf32>
    %cst_26 = arith.constant 0.000000e+00 : f32
    %70 = vector.broadcast %cst_26 : f32 to vector<4x64xf32>
    %71 = arith.maximumf %69, %70 : vector<4x64xf32>
    %72 = vector.broadcast %64 : vector<4x1xf32> to vector<4x64xf32>
    %73 = arith.mulf %31, %72 : vector<4x64xf32>
    %74 = vector.broadcast %65 : vector<4x1xf32> to vector<4x64xf32>
    %75 = arith.addf %73, %74 : vector<4x64xf32>
    %cst_27 = arith.constant 0.000000e+00 : f32
    %76 = vector.broadcast %cst_27 : f32 to vector<4x64xf32>
    %77 = arith.maximumf %75, %76 : vector<4x64xf32>
    %78 = vector.broadcast %64 : vector<4x1xf32> to vector<4x64xf32>
    %79 = arith.mulf %33, %78 : vector<4x64xf32>
    %80 = vector.broadcast %65 : vector<4x1xf32> to vector<4x64xf32>
    %81 = arith.addf %79, %80 : vector<4x64xf32>
    %cst_28 = arith.constant 0.000000e+00 : f32
    %82 = vector.broadcast %cst_28 : f32 to vector<4x64xf32>
    %83 = arith.maximumf %81, %82 : vector<4x64xf32>
    %84 = vector.broadcast %64 : vector<4x1xf32> to vector<4x64xf32>
    %85 = arith.mulf %35, %84 : vector<4x64xf32>
    %86 = vector.broadcast %65 : vector<4x1xf32> to vector<4x64xf32>
    %87 = arith.addf %85, %86 : vector<4x64xf32>
    %cst_29 = arith.constant 0.000000e+00 : f32
    %88 = vector.broadcast %cst_29 : f32 to vector<4x64xf32>
    %89 = arith.maximumf %87, %88 : vector<4x64xf32>
    %90 = arith.addf %71, %77 : vector<4x64xf32>
    %91 = arith.addf %90, %83 : vector<4x64xf32>
    %92 = arith.addf %91, %89 : vector<4x64xf32>
    %cst_30 = arith.constant 2.500000e-01 : f32
    %93 = vector.broadcast %cst_30 : f32 to vector<4x64xf32>
    %94 = arith.mulf %92, %93 : vector<4x64xf32>
    %c0_31 = arith.constant 0 : index
    %c0_32 = arith.constant 0 : index
    %95 = vector.load %arg7[%c0_31, %c0_32] : memref<16x64xf32, #tpu.memory_space<vmem>>, vector<4x64xf32>
    tpu.vector_store %arg7[%c0_31, %c0_32], %94 {strides = array<i32>} : memref<16x64xf32, #tpu.memory_space<vmem>>, vector<4x64xf32>,
    %c0_33 = arith.constant 0 : index
    %c0_34 = arith.constant 0 : index
    %c4 = arith.constant 4 : index
    %c0_35 = arith.constant 0 : index
    %96 = vector.load %arg1[%c0_33, %c0_34, %c4, %c0_35] : memref<1x4x16x64xf32, #tpu.memory_space<vmem>>, vector<1x1x4x64xf32>
    %97 = vector.shape_cast %96 : vector<1x1x4x64xf32> to vector<4x64xf32>
    %c0_36 = arith.constant 0 : index
    %c1_37 = arith.constant 1 : index
    %c4_38 = arith.constant 4 : index
    %c0_39 = arith.constant 0 : index
    %98 = vector.load %arg1[%c0_36, %c1_37, %c4_38, %c0_39] : memref<1x4x16x64xf32, #tpu.memory_space<vmem>>, vector<1x1x4x64xf32>
    %99 = vector.shape_cast %98 : vector<1x1x4x64xf32> to vector<4x64xf32>
    %c0_40 = arith.constant 0 : index
    %c2_41 = arith.constant 2 : index
    %c4_42 = arith.constant 4 : index
    %c0_43 = arith.constant 0 : index
    %100 = vector.load %arg1[%c0_40, %c2_41, %c4_42, %c0_43] : memref<1x4x16x64xf32, #tpu.memory_space<vmem>>, vector<1x1x4x64xf32>
    %101 = vector.shape_cast %100 : vector<1x1x4x64xf32> to vector<4x64xf32>
    %c0_44 = arith.constant 0 : index
    %c3_45 = arith.constant 3 : index
    %c4_46 = arith.constant 4 : index
    %c0_47 = arith.constant 0 : index
    %102 = vector.load %arg1[%c0_44, %c3_45, %c4_46, %c0_47] : memref<1x4x16x64xf32, #tpu.memory_space<vmem>>, vector<1x1x4x64xf32>
    %103 = vector.shape_cast %102 : vector<1x1x4x64xf32> to vector<4x64xf32>
    %104 = vector.shape_cast %97 : vector<4x64xf32> to vector<1x4x64xf32>
    %cst_48 = arith.constant dense<0.000000e+00> : vector<1xf32>
    %105 = vector.multi_reduction <add>, %104, %cst_48 [1, 2] : vector<1x4x64xf32> to vector<1xf32>
    %106 = vector.shape_cast %105 : vector<1xf32> to vector<1x1x1xf32>
    %107 = vector.extract %106[0, 0, 0] : f32 from vector<1x1x1xf32>
    %108 = vector.shape_cast %99 : vector<4x64xf32> to vector<1x4x64xf32>
    %cst_49 = arith.constant dense<0.000000e+00> : vector<1xf32>
    %109 = vector.multi_reduction <add>, %108, %cst_49 [1, 2] : vector<1x4x64xf32> to vector<1xf32>
    %110 = vector.shape_cast %109 : vector<1xf32> to vector<1x1x1xf32>
    %111 = vector.extract %110[0, 0, 0] : f32 from vector<1x1x1xf32>
    %112 = arith.addf %107, %111 : f32
    %113 = vector.shape_cast %101 : vector<4x64xf32> to vector<1x4x64xf32>
    %cst_50 = arith.constant dense<0.000000e+00> : vector<1xf32>
    %114 = vector.multi_reduction <add>, %113, %cst_50 [1, 2] : vector<1x4x64xf32> to vector<1xf32>
    %115 = vector.shape_cast %114 : vector<1xf32> to vector<1x1x1xf32>
    %116 = vector.extract %115[0, 0, 0] : f32 from vector<1x1x1xf32>
    %117 = arith.addf %112, %116 : f32
    %118 = vector.shape_cast %103 : vector<4x64xf32> to vector<1x4x64xf32>
    %cst_51 = arith.constant dense<0.000000e+00> : vector<1xf32>
    %119 = vector.multi_reduction <add>, %118, %cst_51 [1, 2] : vector<1x4x64xf32> to vector<1xf32>
    %120 = vector.shape_cast %119 : vector<1xf32> to vector<1x1x1xf32>
    %121 = vector.extract %120[0, 0, 0] : f32 from vector<1x1x1xf32>
    %122 = arith.addf %117, %121 : f32
    %cst_52 = arith.constant 9.765625E-4 : f32
    %123 = arith.mulf %122, %cst_52 : f32
    %124 = vector.broadcast %123 : f32 to vector<4x64xf32>
    %125 = arith.subf %97, %124 : vector<4x64xf32>
    %126 = vector.broadcast %123 : f32 to vector<4x64xf32>
    %127 = arith.subf %99, %126 : vector<4x64xf32>
    %128 = vector.broadcast %123 : f32 to vector<4x64xf32>
    %129 = arith.subf %101, %128 : vector<4x64xf32>
    %130 = vector.broadcast %123 : f32 to vector<4x64xf32>
    %131 = arith.subf %103, %130 : vector<4x64xf32>
    %132 = arith.mulf %125, %125 : vector<4x64xf32>
    %133 = vector.shape_cast %132 : vector<4x64xf32> to vector<1x4x64xf32>
    %cst_53 = arith.constant dense<0.000000e+00> : vector<1xf32>
    %134 = vector.multi_reduction <add>, %133, %cst_53 [1, 2] : vector<1x4x64xf32> to vector<1xf32>
    %135 = vector.shape_cast %134 : vector<1xf32> to vector<1x1x1xf32>
    %136 = vector.extract %135[0, 0, 0] : f32 from vector<1x1x1xf32>
    %137 = arith.mulf %127, %127 : vector<4x64xf32>
    %138 = vector.shape_cast %137 : vector<4x64xf32> to vector<1x4x64xf32>
    %cst_54 = arith.constant dense<0.000000e+00> : vector<1xf32>
    %139 = vector.multi_reduction <add>, %138, %cst_54 [1, 2] : vector<1x4x64xf32> to vector<1xf32>
    %140 = vector.shape_cast %139 : vector<1xf32> to vector<1x1x1xf32>
    %141 = vector.extract %140[0, 0, 0] : f32 from vector<1x1x1xf32>
    %142 = arith.addf %136, %141 : f32
    %143 = arith.mulf %129, %129 : vector<4x64xf32>
    %144 = vector.shape_cast %143 : vector<4x64xf32> to vector<1x4x64xf32>
    %cst_55 = arith.constant dense<0.000000e+00> : vector<1xf32>
    %145 = vector.multi_reduction <add>, %144, %cst_55 [1, 2] : vector<1x4x64xf32> to vector<1xf32>
    %146 = vector.shape_cast %145 : vector<1xf32> to vector<1x1x1xf32>
    %147 = vector.extract %146[0, 0, 0] : f32 from vector<1x1x1xf32>
    %148 = arith.addf %142, %147 : f32
    %149 = arith.mulf %131, %131 : vector<4x64xf32>
    %150 = vector.shape_cast %149 : vector<4x64xf32> to vector<1x4x64xf32>
    %cst_56 = arith.constant dense<0.000000e+00> : vector<1xf32>
    %151 = vector.multi_reduction <add>, %150, %cst_56 [1, 2] : vector<1x4x64xf32> to vector<1xf32>
    %152 = vector.shape_cast %151 : vector<1xf32> to vector<1x1x1xf32>
    %153 = vector.extract %152[0, 0, 0] : f32 from vector<1x1x1xf32>
    %154 = arith.addf %148, %153 : f32
    %cst_57 = arith.constant 9.765625E-4 : f32
    %155 = arith.mulf %154, %cst_57 : f32
    %cst_58 = arith.constant 9.99999974E-6 : f32
    %156 = arith.addf %155, %cst_58 : f32
    %157 = math.rsqrt %156 : f32
    %c4_59 = arith.constant 4 : index
    %c0_60 = arith.constant 0 : index
    %158 = vector.load %arg2[%c4_59, %c0_60] : memref<16x1xf32, #tpu.memory_space<vmem>>, vector<4x1xf32>
    %159 = vector.broadcast %157 : f32 to vector<4x1xf32>
    %160 = arith.mulf %158, %159 : vector<4x1xf32>
    %c4_61 = arith.constant 4 : index
    %c0_62 = arith.constant 0 : index
    %161 = vector.load %arg3[%c4_61, %c0_62] : memref<16x1xf32, #tpu.memory_space<vmem>>, vector<4x1xf32>
    %162 = vector.broadcast %160 : vector<4x1xf32> to vector<4x64xf32>
    %163 = arith.mulf %125, %162 : vector<4x64xf32>
    %164 = vector.broadcast %161 : vector<4x1xf32> to vector<4x64xf32>
    %165 = arith.addf %163, %164 : vector<4x64xf32>
    %cst_63 = arith.constant 0.000000e+00 : f32
    %166 = vector.broadcast %cst_63 : f32 to vector<4x64xf32>
    %167 = arith.maximumf %165, %166 : vector<4x64xf32>
    %168 = vector.broadcast %160 : vector<4x1xf32> to vector<4x64xf32>
    %169 = arith.mulf %127, %168 : vector<4x64xf32>
    %170 = vector.broadcast %161 : vector<4x1xf32> to vector<4x64xf32>
    %171 = arith.addf %169, %170 : vector<4x64xf32>
    %cst_64 = arith.constant 0.000000e+00 : f32
    %172 = vector.broadcast %cst_64 : f32 to vector<4x64xf32>
    %173 = arith.maximumf %171, %172 : vector<4x64xf32>
    %174 = vector.broadcast %160 : vector<4x1xf32> to vector<4x64xf32>
    %175 = arith.mulf %129, %174 : vector<4x64xf32>
    %176 = vector.broadcast %161 : vector<4x1xf32> to vector<4x64xf32>
    %177 = arith.addf %175, %176 : vector<4x64xf32>
    %cst_65 = arith.constant 0.000000e+00 : f32
    %178 = vector.broadcast %cst_65 : f32 to vector<4x64xf32>
    %179 = arith.maximumf %177, %178 : vector<4x64xf32>
    %180 = vector.broadcast %160 : vector<4x1xf32> to vector<4x64xf32>
    %181 = arith.mulf %131, %180 : vector<4x64xf32>
    %182 = vector.broadcast %161 : vector<4x1xf32> to vector<4x64xf32>
    %183 = arith.addf %181, %182 : vector<4x64xf32>
    %cst_66 = arith.constant 0.000000e+00 : f32
    %184 = vector.broadcast %cst_66 : f32 to vector<4x64xf32>
    %185 = arith.maximumf %183, %184 : vector<4x64xf32>
    %186 = arith.addf %167, %173 : vector<4x64xf32>
    %187 = arith.addf %186, %179 : vector<4x64xf32>
    %188 = arith.addf %187, %185 : vector<4x64xf32>
    %cst_67 = arith.constant 2.500000e-01 : f32
    %189 = vector.broadcast %cst_67 : f32 to vector<4x64xf32>
    %190 = arith.mulf %188, %189 : vector<4x64xf32>
    %c4_68 = arith.constant 4 : index
    %c0_69 = arith.constant 0 : index
    %191 = vector.load %arg7[%c4_68, %c0_69] : memref<16x64xf32, #tpu.memory_space<vmem>>, vector<4x64xf32>
    tpu.vector_store %arg7[%c4_68, %c0_69], %190 {strides = array<i32>} : memref<16x64xf32, #tpu.memory_space<vmem>>, vector<4x64xf32>,
    %c0_70 = arith.constant 0 : index
    %c0_71 = arith.constant 0 : index
    %c8 = arith.constant 8 : index
    %c0_72 = arith.constant 0 : index
    %192 = vector.load %arg1[%c0_70, %c0_71, %c8, %c0_72] : memref<1x4x16x64xf32, #tpu.memory_space<vmem>>, vector<1x1x4x64xf32>
    %193 = vector.shape_cast %192 : vector<1x1x4x64xf32> to vector<4x64xf32>
    %c0_73 = arith.constant 0 : index
    %c1_74 = arith.constant 1 : index
    %c8_75 = arith.constant 8 : index
    %c0_76 = arith.constant 0 : index
    %194 = vector.load %arg1[%c0_73, %c1_74, %c8_75, %c0_76] : memref<1x4x16x64xf32, #tpu.memory_space<vmem>>, vector<1x1x4x64xf32>
    %195 = vector.shape_cast %194 : vector<1x1x4x64xf32> to vector<4x64xf32>
    %c0_77 = arith.constant 0 : index
    %c2_78 = arith.constant 2 : index
    %c8_79 = arith.constant 8 : index
    %c0_80 = arith.constant 0 : index
    %196 = vector.load %arg1[%c0_77, %c2_78, %c8_79, %c0_80] : memref<1x4x16x64xf32, #tpu.memory_space<vmem>>, vector<1x1x4x64xf32>
    %197 = vector.shape_cast %196 : vector<1x1x4x64xf32> to vector<4x64xf32>
    %c0_81 = arith.constant 0 : index
    %c3_82 = arith.constant 3 : index
    %c8_83 = arith.constant 8 : index
    %c0_84 = arith.constant 0 : index
    %198 = vector.load %arg1[%c0_81, %c3_82, %c8_83, %c0_84] : memref<1x4x16x64xf32, #tpu.memory_space<vmem>>, vector<1x1x4x64xf32>
    %199 = vector.shape_cast %198 : vector<1x1x4x64xf32> to vector<4x64xf32>
    %200 = vector.shape_cast %193 : vector<4x64xf32> to vector<1x4x64xf32>
    %cst_85 = arith.constant dense<0.000000e+00> : vector<1xf32>
    %201 = vector.multi_reduction <add>, %200, %cst_85 [1, 2] : vector<1x4x64xf32> to vector<1xf32>
    %202 = vector.shape_cast %201 : vector<1xf32> to vector<1x1x1xf32>
    %203 = vector.extract %202[0, 0, 0] : f32 from vector<1x1x1xf32>
    %204 = vector.shape_cast %195 : vector<4x64xf32> to vector<1x4x64xf32>
    %cst_86 = arith.constant dense<0.000000e+00> : vector<1xf32>
    %205 = vector.multi_reduction <add>, %204, %cst_86 [1, 2] : vector<1x4x64xf32> to vector<1xf32>
    %206 = vector.shape_cast %205 : vector<1xf32> to vector<1x1x1xf32>
    %207 = vector.extract %206[0, 0, 0] : f32 from vector<1x1x1xf32>
    %208 = arith.addf %203, %207 : f32
    %209 = vector.shape_cast %197 : vector<4x64xf32> to vector<1x4x64xf32>
    %cst_87 = arith.constant dense<0.000000e+00> : vector<1xf32>
    %210 = vector.multi_reduction <add>, %209, %cst_87 [1, 2] : vector<1x4x64xf32> to vector<1xf32>
    %211 = vector.shape_cast %210 : vector<1xf32> to vector<1x1x1xf32>
    %212 = vector.extract %211[0, 0, 0] : f32 from vector<1x1x1xf32>
    %213 = arith.addf %208, %212 : f32
    %214 = vector.shape_cast %199 : vector<4x64xf32> to vector<1x4x64xf32>
    %cst_88 = arith.constant dense<0.000000e+00> : vector<1xf32>
    %215 = vector.multi_reduction <add>, %214, %cst_88 [1, 2] : vector<1x4x64xf32> to vector<1xf32>
    %216 = vector.shape_cast %215 : vector<1xf32> to vector<1x1x1xf32>
    %217 = vector.extract %216[0, 0, 0] : f32 from vector<1x1x1xf32>
    %218 = arith.addf %213, %217 : f32
    %cst_89 = arith.constant 9.765625E-4 : f32
    %219 = arith.mulf %218, %cst_89 : f32
    %220 = vector.broadcast %219 : f32 to vector<4x64xf32>
    %221 = arith.subf %193, %220 : vector<4x64xf32>
    %222 = vector.broadcast %219 : f32 to vector<4x64xf32>
    %223 = arith.subf %195, %222 : vector<4x64xf32>
    %224 = vector.broadcast %219 : f32 to vector<4x64xf32>
    %225 = arith.subf %197, %224 : vector<4x64xf32>
    %226 = vector.broadcast %219 : f32 to vector<4x64xf32>
    %227 = arith.subf %199, %226 : vector<4x64xf32>
    %228 = arith.mulf %221, %221 : vector<4x64xf32>
    %229 = vector.shape_cast %228 : vector<4x64xf32> to vector<1x4x64xf32>
    %cst_90 = arith.constant dense<0.000000e+00> : vector<1xf32>
    %230 = vector.multi_reduction <add>, %229, %cst_90 [1, 2] : vector<1x4x64xf32> to vector<1xf32>
    %231 = vector.shape_cast %230 : vector<1xf32> to vector<1x1x1xf32>
    %232 = vector.extract %231[0, 0, 0] : f32 from vector<1x1x1xf32>
    %233 = arith.mulf %223, %223 : vector<4x64xf32>
    %234 = vector.shape_cast %233 : vector<4x64xf32> to vector<1x4x64xf32>
    %cst_91 = arith.constant dense<0.000000e+00> : vector<1xf32>
    %235 = vector.multi_reduction <add>, %234, %cst_91 [1, 2] : vector<1x4x64xf32> to vector<1xf32>
    %236 = vector.shape_cast %235 : vector<1xf32> to vector<1x1x1xf32>
    %237 = vector.extract %236[0, 0, 0] : f32 from vector<1x1x1xf32>
    %238 = arith.addf %232, %237 : f32
    %239 = arith.mulf %225, %225 : vector<4x64xf32>
    %240 = vector.shape_cast %239 : vector<4x64xf32> to vector<1x4x64xf32>
    %cst_92 = arith.constant dense<0.000000e+00> : vector<1xf32>
    %241 = vector.multi_reduction <add>, %240, %cst_92 [1, 2] : vector<1x4x64xf32> to vector<1xf32>
    %242 = vector.shape_cast %241 : vector<1xf32> to vector<1x1x1xf32>
    %243 = vector.extract %242[0, 0, 0] : f32 from vector<1x1x1xf32>
    %244 = arith.addf %238, %243 : f32
    %245 = arith.mulf %227, %227 : vector<4x64xf32>
    %246 = vector.shape_cast %245 : vector<4x64xf32> to vector<1x4x64xf32>
    %cst_93 = arith.constant dense<0.000000e+00> : vector<1xf32>
    %247 = vector.multi_reduction <add>, %246, %cst_93 [1, 2] : vector<1x4x64xf32> to vector<1xf32>
    %248 = vector.shape_cast %247 : vector<1xf32> to vector<1x1x1xf32>
    %249 = vector.extract %248[0, 0, 0] : f32 from vector<1x1x1xf32>
    %250 = arith.addf %244, %249 : f32
    %cst_94 = arith.constant 9.765625E-4 : f32
    %251 = arith.mulf %250, %cst_94 : f32
    %cst_95 = arith.constant 9.99999974E-6 : f32
    %252 = arith.addf %251, %cst_95 : f32
    %253 = math.rsqrt %252 : f32
    %c8_96 = arith.constant 8 : index
    %c0_97 = arith.constant 0 : index
    %254 = vector.load %arg2[%c8_96, %c0_97] : memref<16x1xf32, #tpu.memory_space<vmem>>, vector<4x1xf32>
    %255 = vector.broadcast %253 : f32 to vector<4x1xf32>
    %256 = arith.mulf %254, %255 : vector<4x1xf32>
    %c8_98 = arith.constant 8 : index
    %c0_99 = arith.constant 0 : index
    %257 = vector.load %arg3[%c8_98, %c0_99] : memref<16x1xf32, #tpu.memory_space<vmem>>, vector<4x1xf32>
    %258 = vector.broadcast %256 : vector<4x1xf32> to vector<4x64xf32>
    %259 = arith.mulf %221, %258 : vector<4x64xf32>
    %260 = vector.broadcast %257 : vector<4x1xf32> to vector<4x64xf32>
    %261 = arith.addf %259, %260 : vector<4x64xf32>
    %cst_100 = arith.constant 0.000000e+00 : f32
    %262 = vector.broadcast %cst_100 : f32 to vector<4x64xf32>
    %263 = arith.maximumf %261, %262 : vector<4x64xf32>
    %264 = vector.broadcast %256 : vector<4x1xf32> to vector<4x64xf32>
    %265 = arith.mulf %223, %264 : vector<4x64xf32>
    %266 = vector.broadcast %257 : vector<4x1xf32> to vector<4x64xf32>
    %267 = arith.addf %265, %266 : vector<4x64xf32>
    %cst_101 = arith.constant 0.000000e+00 : f32
    %268 = vector.broadcast %cst_101 : f32 to vector<4x64xf32>
    %269 = arith.maximumf %267, %268 : vector<4x64xf32>
    %270 = vector.broadcast %256 : vector<4x1xf32> to vector<4x64xf32>
    %271 = arith.mulf %225, %270 : vector<4x64xf32>
    %272 = vector.broadcast %257 : vector<4x1xf32> to vector<4x64xf32>
    %273 = arith.addf %271, %272 : vector<4x64xf32>
    %cst_102 = arith.constant 0.000000e+00 : f32
    %274 = vector.broadcast %cst_102 : f32 to vector<4x64xf32>
    %275 = arith.maximumf %273, %274 : vector<4x64xf32>
    %276 = vector.broadcast %256 : vector<4x1xf32> to vector<4x64xf32>
    %277 = arith.mulf %227, %276 : vector<4x64xf32>
    %278 = vector.broadcast %257 : vector<4x1xf32> to vector<4x64xf32>
    %279 = arith.addf %277, %278 : vector<4x64xf32>
    %cst_103 = arith.constant 0.000000e+00 : f32
    %280 = vector.broadcast %cst_103 : f32 to vector<4x64xf32>
    %281 = arith.maximumf %279, %280 : vector<4x64xf32>
    %282 = arith.addf %263, %269 : vector<4x64xf32>
    %283 = arith.addf %282, %275 : vector<4x64xf32>
    %284 = arith.addf %283, %281 : vector<4x64xf32>
    %cst_104 = arith.constant 2.500000e-01 : f32
    %285 = vector.broadcast %cst_104 : f32 to vector<4x64xf32>
    %286 = arith.mulf %284, %285 : vector<4x64xf32>
    %c8_105 = arith.constant 8 : index
    %c0_106 = arith.constant 0 : index
    %287 = vector.load %arg7[%c8_105, %c0_106] : memref<16x64xf32, #tpu.memory_space<vmem>>, vector<4x64xf32>
    tpu.vector_store %arg7[%c8_105, %c0_106], %286 {strides = array<i32>} : memref<16x64xf32, #tpu.memory_space<vmem>>, vector<4x64xf32>,
    %c0_107 = arith.constant 0 : index
    %c0_108 = arith.constant 0 : index
    %c12 = arith.constant 12 : index
    %c0_109 = arith.constant 0 : index
    %288 = vector.load %arg1[%c0_107, %c0_108, %c12, %c0_109] : memref<1x4x16x64xf32, #tpu.memory_space<vmem>>, vector<1x1x4x64xf32>
    %289 = vector.shape_cast %288 : vector<1x1x4x64xf32> to vector<4x64xf32>
    %c0_110 = arith.constant 0 : index
    %c1_111 = arith.constant 1 : index
    %c12_112 = arith.constant 12 : index
    %c0_113 = arith.constant 0 : index
    %290 = vector.load %arg1[%c0_110, %c1_111, %c12_112, %c0_113] : memref<1x4x16x64xf32, #tpu.memory_space<vmem>>, vector<1x1x4x64xf32>
    %291 = vector.shape_cast %290 : vector<1x1x4x64xf32> to vector<4x64xf32>
    %c0_114 = arith.constant 0 : index
    %c2_115 = arith.constant 2 : index
    %c12_116 = arith.constant 12 : index
    %c0_117 = arith.constant 0 : index
    %292 = vector.load %arg1[%c0_114, %c2_115, %c12_116, %c0_117] : memref<1x4x16x64xf32, #tpu.memory_space<vmem>>, vector<1x1x4x64xf32>
    %293 = vector.shape_cast %292 : vector<1x1x4x64xf32> to vector<4x64xf32>
    %c0_118 = arith.constant 0 : index
    %c3_119 = arith.constant 3 : index
    %c12_120 = arith.constant 12 : index
    %c0_121 = arith.constant 0 : index
    %294 = vector.load %arg1[%c0_118, %c3_119, %c12_120, %c0_121] : memref<1x4x16x64xf32, #tpu.memory_space<vmem>>, vector<1x1x4x64xf32>
    %295 = vector.shape_cast %294 : vector<1x1x4x64xf32> to vector<4x64xf32>
    %296 = vector.shape_cast %289 : vector<4x64xf32> to vector<1x4x64xf32>
    %cst_122 = arith.constant dense<0.000000e+00> : vector<1xf32>
    %297 = vector.multi_reduction <add>, %296, %cst_122 [1, 2] : vector<1x4x64xf32> to vector<1xf32>
    %298 = vector.shape_cast %297 : vector<1xf32> to vector<1x1x1xf32>
    %299 = vector.extract %298[0, 0, 0] : f32 from vector<1x1x1xf32>
    %300 = vector.shape_cast %291 : vector<4x64xf32> to vector<1x4x64xf32>
    %cst_123 = arith.constant dense<0.000000e+00> : vector<1xf32>
    %301 = vector.multi_reduction <add>, %300, %cst_123 [1, 2] : vector<1x4x64xf32> to vector<1xf32>
    %302 = vector.shape_cast %301 : vector<1xf32> to vector<1x1x1xf32>
    %303 = vector.extract %302[0, 0, 0] : f32 from vector<1x1x1xf32>
    %304 = arith.addf %299, %303 : f32
    %305 = vector.shape_cast %293 : vector<4x64xf32> to vector<1x4x64xf32>
    %cst_124 = arith.constant dense<0.000000e+00> : vector<1xf32>
    %306 = vector.multi_reduction <add>, %305, %cst_124 [1, 2] : vector<1x4x64xf32> to vector<1xf32>
    %307 = vector.shape_cast %306 : vector<1xf32> to vector<1x1x1xf32>
    %308 = vector.extract %307[0, 0, 0] : f32 from vector<1x1x1xf32>
    %309 = arith.addf %304, %308 : f32
    %310 = vector.shape_cast %295 : vector<4x64xf32> to vector<1x4x64xf32>
    %cst_125 = arith.constant dense<0.000000e+00> : vector<1xf32>
    %311 = vector.multi_reduction <add>, %310, %cst_125 [1, 2] : vector<1x4x64xf32> to vector<1xf32>
    %312 = vector.shape_cast %311 : vector<1xf32> to vector<1x1x1xf32>
    %313 = vector.extract %312[0, 0, 0] : f32 from vector<1x1x1xf32>
    %314 = arith.addf %309, %313 : f32
    %cst_126 = arith.constant 9.765625E-4 : f32
    %315 = arith.mulf %314, %cst_126 : f32
    %316 = vector.broadcast %315 : f32 to vector<4x64xf32>
    %317 = arith.subf %289, %316 : vector<4x64xf32>
    %318 = vector.broadcast %315 : f32 to vector<4x64xf32>
    %319 = arith.subf %291, %318 : vector<4x64xf32>
    %320 = vector.broadcast %315 : f32 to vector<4x64xf32>
    %321 = arith.subf %293, %320 : vector<4x64xf32>
    %322 = vector.broadcast %315 : f32 to vector<4x64xf32>
    %323 = arith.subf %295, %322 : vector<4x64xf32>
    %324 = arith.mulf %317, %317 : vector<4x64xf32>
    %325 = vector.shape_cast %324 : vector<4x64xf32> to vector<1x4x64xf32>
    %cst_127 = arith.constant dense<0.000000e+00> : vector<1xf32>
    %326 = vector.multi_reduction <add>, %325, %cst_127 [1, 2] : vector<1x4x64xf32> to vector<1xf32>
    %327 = vector.shape_cast %326 : vector<1xf32> to vector<1x1x1xf32>
    %328 = vector.extract %327[0, 0, 0] : f32 from vector<1x1x1xf32>
    %329 = arith.mulf %319, %319 : vector<4x64xf32>
    %330 = vector.shape_cast %329 : vector<4x64xf32> to vector<1x4x64xf32>
    %cst_128 = arith.constant dense<0.000000e+00> : vector<1xf32>
    %331 = vector.multi_reduction <add>, %330, %cst_128 [1, 2] : vector<1x4x64xf32> to vector<1xf32>
    %332 = vector.shape_cast %331 : vector<1xf32> to vector<1x1x1xf32>
    %333 = vector.extract %332[0, 0, 0] : f32 from vector<1x1x1xf32>
    %334 = arith.addf %328, %333 : f32
    %335 = arith.mulf %321, %321 : vector<4x64xf32>
    %336 = vector.shape_cast %335 : vector<4x64xf32> to vector<1x4x64xf32>
    %cst_129 = arith.constant dense<0.000000e+00> : vector<1xf32>
    %337 = vector.multi_reduction <add>, %336, %cst_129 [1, 2] : vector<1x4x64xf32> to vector<1xf32>
    %338 = vector.shape_cast %337 : vector<1xf32> to vector<1x1x1xf32>
    %339 = vector.extract %338[0, 0, 0] : f32 from vector<1x1x1xf32>
    %340 = arith.addf %334, %339 : f32
    %341 = arith.mulf %323, %323 : vector<4x64xf32>
    %342 = vector.shape_cast %341 : vector<4x64xf32> to vector<1x4x64xf32>
    %cst_130 = arith.constant dense<0.000000e+00> : vector<1xf32>
    %343 = vector.multi_reduction <add>, %342, %cst_130 [1, 2] : vector<1x4x64xf32> to vector<1xf32>
    %344 = vector.shape_cast %343 : vector<1xf32> to vector<1x1x1xf32>
    %345 = vector.extract %344[0, 0, 0] : f32 from vector<1x1x1xf32>
    %346 = arith.addf %340, %345 : f32
    %cst_131 = arith.constant 9.765625E-4 : f32
    %347 = arith.mulf %346, %cst_131 : f32
    %cst_132 = arith.constant 9.99999974E-6 : f32
    %348 = arith.addf %347, %cst_132 : f32
    %349 = math.rsqrt %348 : f32
    %c12_133 = arith.constant 12 : index
    %c0_134 = arith.constant 0 : index
    %350 = vector.load %arg2[%c12_133, %c0_134] : memref<16x1xf32, #tpu.memory_space<vmem>>, vector<4x1xf32>
    %351 = vector.broadcast %349 : f32 to vector<4x1xf32>
    %352 = arith.mulf %350, %351 : vector<4x1xf32>
    %c12_135 = arith.constant 12 : index
    %c0_136 = arith.constant 0 : index
    %353 = vector.load %arg3[%c12_135, %c0_136] : memref<16x1xf32, #tpu.memory_space<vmem>>, vector<4x1xf32>
    %354 = vector.broadcast %352 : vector<4x1xf32> to vector<4x64xf32>
    %355 = arith.mulf %317, %354 : vector<4x64xf32>
    %356 = vector.broadcast %353 : vector<4x1xf32> to vector<4x64xf32>
    %357 = arith.addf %355, %356 : vector<4x64xf32>
    %cst_137 = arith.constant 0.000000e+00 : f32
    %358 = vector.broadcast %cst_137 : f32 to vector<4x64xf32>
    %359 = arith.maximumf %357, %358 : vector<4x64xf32>
    %360 = vector.broadcast %352 : vector<4x1xf32> to vector<4x64xf32>
    %361 = arith.mulf %319, %360 : vector<4x64xf32>
    %362 = vector.broadcast %353 : vector<4x1xf32> to vector<4x64xf32>
    %363 = arith.addf %361, %362 : vector<4x64xf32>
    %cst_138 = arith.constant 0.000000e+00 : f32
    %364 = vector.broadcast %cst_138 : f32 to vector<4x64xf32>
    %365 = arith.maximumf %363, %364 : vector<4x64xf32>
    %366 = vector.broadcast %352 : vector<4x1xf32> to vector<4x64xf32>
    %367 = arith.mulf %321, %366 : vector<4x64xf32>
    %368 = vector.broadcast %353 : vector<4x1xf32> to vector<4x64xf32>
    %369 = arith.addf %367, %368 : vector<4x64xf32>
    %cst_139 = arith.constant 0.000000e+00 : f32
    %370 = vector.broadcast %cst_139 : f32 to vector<4x64xf32>
    %371 = arith.maximumf %369, %370 : vector<4x64xf32>
    %372 = vector.broadcast %352 : vector<4x1xf32> to vector<4x64xf32>
    %373 = arith.mulf %323, %372 : vector<4x64xf32>
    %374 = vector.broadcast %353 : vector<4x1xf32> to vector<4x64xf32>
    %375 = arith.addf %373, %374 : vector<4x64xf32>
    %cst_140 = arith.constant 0.000000e+00 : f32
    %376 = vector.broadcast %cst_140 : f32 to vector<4x64xf32>
    %377 = arith.maximumf %375, %376 : vector<4x64xf32>
    %378 = arith.addf %359, %365 : vector<4x64xf32>
    %379 = arith.addf %378, %371 : vector<4x64xf32>
    %380 = arith.addf %379, %377 : vector<4x64xf32>
    %cst_141 = arith.constant 2.500000e-01 : f32
    %381 = vector.broadcast %cst_141 : f32 to vector<4x64xf32>
    %382 = arith.mulf %380, %381 : vector<4x64xf32>
    %c12_142 = arith.constant 12 : index
    %c0_143 = arith.constant 0 : index
    %383 = vector.load %arg7[%c12_142, %c0_143] : memref<16x64xf32, #tpu.memory_space<vmem>>, vector<4x64xf32>
    tpu.vector_store %arg7[%c12_142, %c0_143], %382 {strides = array<i32>} : memref<16x64xf32, #tpu.memory_space<vmem>>, vector<4x64xf32>,
    %c0_144 = arith.constant 0 : index
    %c0_145 = arith.constant 0 : index
    %384 = vector.load %arg4[%c0_144, %c0_145] : memref<8x16xf32, #tpu.memory_space<vmem>>, vector<8x16xf32>
    %c0_146 = arith.constant 0 : index
    %c0_147 = arith.constant 0 : index
    %385 = vector.load %arg7[%c0_146, %c0_147] : memref<16x64xf32, #tpu.memory_space<vmem>>, vector<16x64xf32>
    %cst_148 = arith.constant dense<0.000000e+00> : vector<8x64xf32>
    %386 = tpu.matmul %384, %385, %cst_148 {dimension_numbers = #tpu.dot_dimension_numbers<[1], [0], [0], [1], [0, 0, 1, 1], [], []>} : vector<8x16xf32>, vector<16x64xf32>, vector<8x64xf32> -> vector<8x64xf32>
    %c0_149 = arith.constant 0 : index
    %c0_150 = arith.constant 0 : index
    %387 = vector.load %arg5[%c0_149, %c0_150] : memref<8x1xf32, #tpu.memory_space<vmem>>, vector<8x1xf32>
    %388 = vector.broadcast %387 : vector<8x1xf32> to vector<8x64xf32>
    %389 = arith.addf %386, %388 : vector<8x64xf32>
    %c0_151 = arith.constant 0 : index
    %c0_152 = arith.constant 0 : index
    %c0_153 = arith.constant 0 : index
    %390 = vector.load %arg6[%c0_151, %c0_152, %c0_153] : memref<1x8x64xf32, #tpu.memory_space<vmem>>, vector<1x8x64xf32>
    %391 = vector.shape_cast %390 : vector<1x8x64xf32> to vector<8x64xf32>
    %392 = vector.shape_cast %389 : vector<8x64xf32> to vector<1x8x64xf32>
    tpu.vector_store %arg6[%c0_151, %c0_152, %c0_153], %392 {strides = array<i32>} : memref<1x8x64xf32, #tpu.memory_space<vmem>>, vector<1x8x64xf32>,
    return
  }
  func.func @transform_0(%arg0: i32) -> (i32, i32, i32, i32) {
    %c0_i32 = arith.constant 0 : i32
    %c0_i32_0 = arith.constant 0 : i32
    %c0_i32_1 = arith.constant 0 : i32
    %c0_i32_2 = arith.constant 0 : i32
    return %arg0, %c0_i32, %c0_i32_0, %c0_i32_1 : i32, i32, i32, i32
  }
  func.func @transform_1(%arg0: i32) -> (i32, i32) {
    %c0_i32 = arith.constant 0 : i32
    %c0_i32_0 = arith.constant 0 : i32
    %c0_i32_1 = arith.constant 0 : i32
    return %c0_i32, %c0_i32_0 : i32, i32
  }
  func.func @transform_2(%arg0: i32) -> (i32, i32) {
    %c0_i32 = arith.constant 0 : i32
    %c0_i32_0 = arith.constant 0 : i32
    %c0_i32_1 = arith.constant 0 : i32
    return %c0_i32, %c0_i32_0 : i32, i32
  }
  func.func @transform_3(%arg0: i32) -> (i32, i32) {
    %c0_i32 = arith.constant 0 : i32
    %c0_i32_0 = arith.constant 0 : i32
    %c0_i32_1 = arith.constant 0 : i32
    return %c0_i32, %c0_i32_0 : i32, i32
  }
  func.func @transform_4(%arg0: i32) -> (i32, i32) {
    %c0_i32 = arith.constant 0 : i32
    %c0_i32_0 = arith.constant 0 : i32
    %c0_i32_1 = arith.constant 0 : i32
    return %c0_i32, %c0_i32_0 : i32, i32
  }
  func.func @transform_5(%arg0: i32) -> (i32, i32, i32) {
    %c0_i32 = arith.constant 0 : i32
    %c0_i32_0 = arith.constant 0 : i32
    %c0_i32_1 = arith.constant 0 : i32
    return %arg0, %c0_i32, %c0_i32_0 : i32, i32, i32
  }
}

</mosaic_0001>

<bundles_post_ra>
// kernel: transition_layer_forward.1
= control target key start
LH: loop header
LB: loop body
LE: loop exit
PB: predicated region body
PF: predicated region fallthrough
CT: control target
= control target key end

     0   :  { %s1077_s18 = smov 0   ;;  %s1331_s0 = inlined_call_operand.vmem [shape: f32[2,4,16,64], index: 0, kind: input, shape index: {}]   ;;  %s1332_s1 = inlined_call_operand.vmem [shape: f32[16,1], index: 1, kind: input, shape index: {}]   ;;  %s1333_s2 = inlined_call_operand.vmem [shape: f32[16,1], index: 2, kind: input, shape index: {}]   ;;  %s1334_s3 = inlined_call_operand.vmem [shape: f32[8,16], index: 3, kind: input, shape index: {}]   ;;  %s1335_s4 = inlined_call_operand.vmem [shape: f32[8,1], index: 4, kind: input, shape index: {}]   ;;  %s1336_s5 = inlined_call_operand.vmem [shape: f32[2,8,64], index: 5, kind: output, shape index: {}]  }
   0x1 LB: > { %s909_s19 = sadd.s32 4294967295, %s1042_s18   ;;  %p913_p0 = scmp.ge.s32.totalorder %s1042_s18, 1  ;;  %s1042_s18 = sphi %s1077_s18, %s15_s18  }
   0x2   : > { %p187_p1 = scmp.lt.s32.totalorder %s1042_s18, 3 }
   0x4   : > { %p188_p2 = pnand %p913_p0, %p187_p1 }
   0x5   : > { %p214_p3 = scmp.lt.s32.totalorder (!%p188_p2), %s909_s19, 1 }
   0x6   : > { %191 = sbr.rel (%p188_p2) target bundleno = 1739 (0x6cb), region = 40 }
   0xb   : > { %s1338_s19 = smov (!%p214_p3, %s909_s19), 1  ;;  %vm230_vm0 = vcmask 519168   ;;  %vm1046_vm1 = vmmov 0   ;;  %vm780_vm2 = vcmask 130048   ;;  %vm854_vm3 = vcmask 523264  }
   0xc   : > { %s932_s20 = sshll.u32 %s1338_s19, 6 }
   0xd   : > { %s1091_s23 = scalar_lea.vmem %s1331_s0, %s932_s20 }
   0xe   : > { %v918_v0 = vld [vmem:[%s1091_s23 + $0x20] sm:$0xf]  ;;  %v919_v2 = vld [vmem:[%s1091_s23 + $0x30] sm:$0xf]  ;;  %v1120_v47 = vld [vmem:[%s1091_s23 + $0x4] sm:$0xf] }
   0xf   : > { %v223_v1 = vld [vmem:[%s1091_s23] sm:$0xf]  ;;  %v252_v3 = vsel %vm230_vm0, %v918_v0, 0.0  ;;  %v917_v5 = vld [vmem:[%s1091_s23 + $0x10] sm:$0xf]  ;;  %v263_v6 = vsel %vm230_vm0, %v919_v2, 0.0 }
  0x10   : > { %v231_v4 = vsel %vm230_vm0, %v223_v1, 0.0  ;;  %253 = vadd.xlane.f32.xlu1 %v252_v3  ;;  %v241_v7 = vsel %vm230_vm0, %v917_v5, 0.0  ;;  %v1123_v48 = vld [vmem:[%s1091_s23 + $0x14] sm:$0xf]  ;;  %v367_v51 = vsel %vm230_vm0, %v1120_v47, 0.0 }
  0x11   : > { %232 = vadd.xlane.f32.xlu0 %v231_v4  ;;  %v377_v52 = vsel %vm230_vm0, %v1123_v48, 0.0  ;;  %v1132_v53 = vld [vmem:[%s1091_s23 + $0x24] sm:$0xf]  ;;  %v1135_v54 = vld [vmem:[%s1091_s23 + $0x34] sm:$0xf] }
  0x12   : > { %v388_v55 = vsel %vm230_vm0, %v1132_v53, 0.0  ;;  %v399_v56 = vsel %vm230_vm0, %v1135_v54, 0.0 }
  0x14   : > { %264 = vadd.xlane.f32.xlu1 %v263_v6 }
  0x15   : > { %242 = vadd.xlane.f32.xlu0 %v241_v7 }
  0x99   : > { %v254_v8 = vpop.xlane.xlu1 %253 }
  0x9a   : > { %v233_v9 = vpop.xlane.xlu0 %232  ;;  %v255_v10 = vrot.slane %v254_v8, 4 }
  0x9b   : > { %v234_v11 = vrot.slane %v233_v9, 4 }
  0x9c   : > { %v256_v12 = vadd.f32 %v255_v10, %v254_v8 }
  0x9d   : > { %v235_v13 = vadd.f32 %v234_v11, %v233_v9  ;;  %v265_v14 = vpop.xlane.xlu1 %264 }
  0x9e   : > { %v243_v15 = vpop.xlane.xlu0 %242  ;;  %v257_v16 = vrot.slane %v256_v12, 2  ;;  %v266_v18 = vrot.slane %v265_v14, 4 }
  0x9f   : > { %v236_v17 = vrot.slane %v235_v13, 2  ;;  %v244_v19 = vrot.slane %v243_v15, 4 }
  0xa0   : > { %v267_v20 = vadd.f32 %v266_v18, %v265_v14  ;;  %v258_v23 = vadd.f32 %v257_v16, %v256_v12 }
  0xa1   : > { %v245_v21 = vadd.f32 %v244_v19, %v243_v15  ;;  %v237_v22 = vadd.f32 %v236_v17, %v235_v13 }
  0xa2   : > { %v268_v24 = vrot.slane %v267_v20, 2  ;;  %v259_v30 = vrot.slane %v258_v23, 1 }
  0xa3   : > { %v246_v25 = vrot.slane %v245_v21, 2  ;;  %v238_v26 = vrot.slane %v237_v22, 1 }
  0xa4   : > { %v269_v29 = vadd.f32 %v268_v24, %v267_v20  ;;  %v260_v35 = vadd.f32 %v259_v30, %v258_v23 }
  0xa5   : > { %v239_v27 = vadd.f32 %v238_v26, %v237_v22  ;;  %v247_v28 = vadd.f32 %v246_v25, %v245_v21 }
  0xa6   : > { %v270_v32 = vrot.slane %v269_v29, 1 }
  0xa7   : > { %943 = vpush %v239_v27  ;;  %v248_v31 = vrot.slane %v247_v28, 1 }
  0xa8   : > { %v271_v34 = vadd.f32 %v270_v32, %v269_v29 }
  0xa9   : > { %v249_v33 = vadd.f32 %v248_v31, %v247_v28 }
  0xab   : > { %945 = vpush %v249_v33 }
  0xac   : > { %947 = vpush %v260_v35 }
  0xad   : > { %949 = vpush %v271_v34 }
  0xd8   : > { %s944_s24 = spop %943 }
  0xdc   : > { %s946_s25 = spop %945 }
  0xdd   : > { %s251_s26 = sadd.f32 %s946_s25, %s944_s24  ;;  %s948_s27 = spop %947 }
  0xde   : > { %s950_s29 = spop %949 }
  0xdf   : > { %s262_s28 = sadd.f32 %s948_s27, %s251_s26 }
  0xe1   : > { %s273_s30 = sadd.f32 %s950_s29, %s262_s28 }
  0xe3   : > { %s274_s6 = smul.f32 0.0009765625, %s273_s30 }
  0xe5   : > { %v275_v36 = vstv %s274_s6 }
  0xe6   : > { %v1101_v37 = vsub.f32 %v917_v5, %v275_v36  ;;  %v1103_v38 = vsub.f32 %v223_v1, %v275_v36  ;;  %v1105_v39 = vsub.f32 %v919_v2, %v275_v36  ;;  %v1107_v40 = vsub.f32 %v918_v0, %v275_v36 }
  0xe8   : > { %v291_v41 = vmul.f32 %v1101_v37, %v1101_v37  ;;  %v280_v42 = vmul.f32 %v1103_v38, %v1103_v38  ;;  %v315_v45 = vmul.f32 %v1105_v39, %v1105_v39  ;;  %v303_v46 = vmul.f32 %v1107_v40, %v1107_v40 }
  0xea   : > { %v292_v43 = vsel %vm230_vm0, %v291_v41, 0.0  ;;  %v281_v44 = vsel %vm230_vm0, %v280_v42, 0.0  ;;  %v316_v49 = vsel %vm230_vm0, %v315_v45, 0.0  ;;  %v304_v50 = vsel %vm230_vm0, %v303_v46, 0.0 }
  0xeb   : > { %293 = vadd.xlane.f32.xlu1 %v292_v43  ;;  %282 = vadd.xlane.f32.xlu0 %v281_v44 }
  0xef   : > { %317 = vadd.xlane.f32.xlu1 %v316_v49  ;;  %305 = vadd.xlane.f32.xlu0 %v304_v50 }
  0xf3   : > { %368 = vadd.xlane.f32.xlu0 %v367_v51  ;;  %378 = vadd.xlane.f32.xlu1 %v377_v52 }
  0xf7   : > { %389 = vadd.xlane.f32.xlu0 %v388_v55  ;;  %400 = vadd.xlane.f32.xlu1 %v399_v56 }
 0x174   : > { %v294_v57 = vpop.xlane.xlu1 %293  ;;  %v283_v58 = vpop.xlane.xlu0 %282 }
 0x175   : > { %v295_v59 = vrot.slane %v294_v57, 4  ;;  %v284_v60 = vrot.slane %v283_v58, 4 }
 0x177   : > { %v296_v61 = vadd.f32 %v295_v59, %v294_v57  ;;  %v285_v62 = vadd.f32 %v284_v60, %v283_v58 }
 0x178   : > { %v318_v63 = vpop.xlane.xlu1 %317  ;;  %v306_v0 = vpop.xlane.xlu0 %305 }
 0x179   : > { %v297_v1 = vrot.slane %v296_v61, 2  ;;  %v286_v2 = vrot.slane %v285_v62, 2  ;;  %v319_v3 = vrot.slane %v318_v63, 4  ;;  %v307_v4 = vrot.slane %v306_v0, 4 }
 0x17b   : > { %v320_v5 = vadd.f32 %v319_v3, %v318_v63  ;;  %v308_v6 = vadd.f32 %v307_v4, %v306_v0  ;;  %v287_v7 = vadd.f32 %v286_v2, %v285_v62  ;;  %v298_v8 = vadd.f32 %v297_v1, %v296_v61  ;;  %v1169_v3 = vld [vmem:[%s1091_s23 + $0x18] sm:$0xf] }
 0x17c   : > { %v369_v21 = vpop.xlane.xlu0 %368  ;;  %v379_v22 = vpop.xlane.xlu1 %378 }
 0x17d   : > { %v321_v9 = vrot.slane %v320_v5, 2  ;;  %v309_v10 = vrot.slane %v308_v6, 2  ;;  %v288_v11 = vrot.slane %v287_v7, 1  ;;  %v299_v12 = vrot.slane %v298_v8, 1 }
 0x17e   : > { %v370_v24 = vrot.slane %v369_v21, 4  ;;  %v380_v26 = vrot.slane %v379_v22, 4 }
 0x17f   : > { %v289_v13 = vadd.f32 %v288_v11, %v287_v7  ;;  %v300_v14 = vadd.f32 %v299_v12, %v298_v8  ;;  %v310_v15 = vadd.f32 %v309_v10, %v308_v6  ;;  %v322_v16 = vadd.f32 %v321_v9, %v320_v5  ;;  %v1178_v8 = vld [vmem:[%s1091_s23 + $0x28] sm:$0xf]  ;;  %v1181_v9 = vld [vmem:[%s1091_s23 + $0x38] sm:$0xf] }
 0x180   : > { %v390_v23 = vpop.xlane.xlu0 %389  ;;  %v401_v25 = vpop.xlane.xlu1 %400  ;;  %v371_v29 = vadd.f32 %v370_v24, %v369_v21  ;;  %v381_v30 = vadd.f32 %v380_v26, %v379_v22  ;;  %v513_v7 = vsel %vm230_vm0, %v1169_v3, 0.0  ;;  %v524_v10 = vsel %vm230_vm0, %v1178_v8, 0.0 }
 0x181   : > { %951 = vpush %v289_v13  ;;  %v311_v17 = vrot.slane %v310_v15, 1  ;;  %v323_v18 = vrot.slane %v322_v16, 1  ;;  %v391_v27 = vrot.slane %v390_v23, 4  ;;  %v402_v28 = vrot.slane %v401_v25, 4 }
 0x182   : > { %953 = vpush %v300_v14  ;;  %v372_v34 = vrot.slane %v371_v29, 2  ;;  %v382_v35 = vrot.slane %v381_v30, 2  ;;  %v535_v11 = vsel %vm230_vm0, %v1181_v9, 0.0 }
 0x183   : > { %v312_v19 = vadd.f32 %v311_v17, %v310_v15  ;;  %v324_v20 = vadd.f32 %v323_v18, %v322_v16  ;;  %v392_v32 = vadd.f32 %v391_v27, %v390_v23  ;;  %v403_v33 = vadd.f32 %v402_v28, %v401_v25 }
 0x184   : > { %v373_v42 = vadd.f32 %v372_v34, %v371_v29  ;;  %v383_v43 = vadd.f32 %v382_v35, %v381_v30 }
 0x185   : > { %955 = vpush %v312_v19  ;;  %v393_v36 = vrot.slane %v392_v32, 2  ;;  %v404_v41 = vrot.slane %v403_v33, 2 }
 0x186   : > { %957 = vpush %v324_v20  ;;  %v374_v46 = vrot.slane %v373_v42, 1  ;;  %v384_v49 = vrot.slane %v383_v43, 1 }
 0x187   : > { %v394_v44 = vadd.f32 %v393_v36, %v392_v32  ;;  %v405_v45 = vadd.f32 %v404_v41, %v403_v33 }
 0x188   : > { %v375_v55 = vadd.f32 %v374_v46, %v373_v42  ;;  %v385_v56 = vadd.f32 %v384_v49, %v383_v43 }
 0x189   : > { %v395_v50 = vrot.slane %v394_v44, 1  ;;  %v406_v51 = vrot.slane %v405_v45, 1 }
 0x18b   : > { %v396_v57 = vadd.f32 %v395_v50, %v394_v44  ;;  %v407_v58 = vadd.f32 %v406_v51, %v405_v45 }
 0x1b2   : > { %s952_s7 = spop %951 }
 0x1b3   : > { %s954_s8 = spop %953 }
 0x1b4   : > { %s302_s9 = sadd.f32 %s954_s8, %s952_s7 }
 0x1b6   : > { %s956_s10 = spop %955 }
 0x1b7   : > { %s314_s11 = sadd.f32 %s956_s10, %s302_s9  ;;  %s958_s12 = spop %957 }
 0x1b9   : > { %s326_s13 = sadd.f32 %s958_s12, %s314_s11 }
 0x1bb   : > { %s327_s14 = smul.f32 0.0009765625, %s326_s13 }
 0x1bd   : > { %s328_s15 = sadd.f32 1e-05, %s327_s14 }
 0x1bf   : > { %v329_v31 = vstv %s328_s15 }
 0x1c0   : > { %1028 = vrsqrt.f32 %v329_v31 }
 0x1cd   : > { %v1029_v52 = vpop.eup %1028 }
 0x1ce   : > { %959 = vpush %v1029_v52 }
 0x1cf   : > { %961 = vpush %v375_v55 }
 0x1d0   : > { %963 = vpush %v385_v56 }
 0x1d1   : > { %965 = vpush %v396_v57 }
 0x1d2   : > { %967 = vpush %v407_v58 }
 0x1ff   : > { %s1141_s16 = spop %959 }
 0x200   : > { %s962_s17 = spop %961 }
 0x201   : > { %s964_s20 = spop %963 }
 0x202   : > { %s387_s21 = sadd.f32 %s964_s20, %s962_s17  ;;  %s966_s22 = spop %965 }
 0x203   : > { %s968_s25 = spop %967 }
 0x204   : > { %s398_s24 = sadd.f32 %s966_s22, %s387_s21 }
 0x206   : > { %s409_s26 = sadd.f32 %s968_s25, %s398_s24 }
 0x208   : > { %s410_s27 = smul.f32 0.0009765625, %s409_s26 }
 0x20a   : > { %v411_v59 = vstv %s410_s27 }
 0x20b   : > { %v1144_v60 = vsub.f32 %v1123_v48, %v411_v59  ;;  %v1147_v61 = vsub.f32 %v1120_v47, %v411_v59  ;;  %v1150_v62 = vsub.f32 %v1135_v54, %v411_v59  ;;  %v1153_v63 = vsub.f32 %v1132_v53, %v411_v59  ;;  %v1166_v53 = vld [vmem:[%s1091_s23 + $0x8] sm:$0xf] }
 0x20c   : > { %v503_v6 = vsel %vm230_vm0, %v1166_v53, 0.0 }
 0x20d   : > { %v427_v0 = vmul.f32 %v1144_v60, %v1144_v60  ;;  %v416_v1 = vmul.f32 %v1147_v61, %v1147_v61  ;;  %v451_v47 = vmul.f32 %v1150_v62, %v1150_v62  ;;  %v439_v54 = vmul.f32 %v1153_v63, %v1153_v63 }
 0x20f   : > { %v428_v48 = vsel %vm230_vm0, %v427_v0, 0.0  ;;  %v417_v2 = vsel %vm230_vm0, %v416_v1, 0.0  ;;  %v452_v4 = vsel %vm230_vm0, %v451_v47, 0.0  ;;  %v440_v5 = vsel %vm230_vm0, %v439_v54, 0.0 }
 0x210   : > { %429 = vadd.xlane.f32.xlu1 %v428_v48  ;;  %418 = vadd.xlane.f32.xlu0 %v417_v2 }
 0x214   : > { %453 = vadd.xlane.f32.xlu1 %v452_v4  ;;  %441 = vadd.xlane.f32.xlu0 %v440_v5 }
 0x218   : > { %504 = vadd.xlane.f32.xlu0 %v503_v6  ;;  %514 = vadd.xlane.f32.xlu1 %v513_v7 }
 0x21c   : > { %525 = vadd.xlane.f32.xlu0 %v524_v10  ;;  %536 = vadd.xlane.f32.xlu1 %v535_v11 }
 0x299   : > { %v430_v12 = vpop.xlane.xlu1 %429  ;;  %v419_v13 = vpop.xlane.xlu0 %418 }
 0x29a   : > { %v431_v14 = vrot.slane %v430_v12, 4  ;;  %v420_v15 = vrot.slane %v419_v13, 4 }
 0x29c   : > { %v432_v16 = vadd.f32 %v431_v14, %v430_v12  ;;  %v421_v17 = vadd.f32 %v420_v15, %v419_v13 }
 0x29d   : > { %v454_v18 = vpop.xlane.xlu1 %453  ;;  %v442_v19 = vpop.xlane.xlu0 %441 }
 0x29e   : > { %v433_v20 = vrot.slane %v432_v16, 2  ;;  %v422_v21 = vrot.slane %v421_v17, 2  ;;  %v455_v22 = vrot.slane %v454_v18, 4  ;;  %v443_v23 = vrot.slane %v442_v19, 4 }
 0x2a0   : > { %v456_v24 = vadd.f32 %v455_v22, %v454_v18  ;;  %v444_v25 = vadd.f32 %v443_v23, %v442_v19  ;;  %v423_v26 = vadd.f32 %v422_v21, %v421_v17  ;;  %v434_v27 = vadd.f32 %v433_v20, %v432_v16 }
 0x2a1   : > { %v505_v44 = vpop.xlane.xlu0 %504  ;;  %v515_v45 = vpop.xlane.xlu1 %514 }
 0x2a2   : > { %v457_v28 = vrot.slane %v456_v24, 2  ;;  %v445_v29 = vrot.slane %v444_v25, 2  ;;  %v424_v30 = vrot.slane %v423_v26, 1  ;;  %v435_v31 = vrot.slane %v434_v27, 1 }
 0x2a3   : > { %v506_v49 = vrot.slane %v505_v44, 4  ;;  %v516_v51 = vrot.slane %v515_v45, 4 }
 0x2a4   : > { %v425_v32 = vadd.f32 %v424_v30, %v423_v26  ;;  %v436_v33 = vadd.f32 %v435_v31, %v434_v27  ;;  %v446_v34 = vadd.f32 %v445_v29, %v444_v25  ;;  %v458_v35 = vadd.f32 %v457_v28, %v456_v24  ;;  %v1215_v26 = vld [vmem:[%s1091_s23 + $0x1c] sm:$0xf]  ;;  %v1224_v31 = vld [vmem:[%s1091_s23 + $0x2c] sm:$0xf] }
 0x2a5   : > { %v526_v46 = vpop.xlane.xlu0 %525  ;;  %v537_v50 = vpop.xlane.xlu1 %536  ;;  %v507_v56 = vadd.f32 %v506_v49, %v505_v44  ;;  %v517_v57 = vadd.f32 %v516_v51, %v515_v45  ;;  %v649_v30 = vsel %vm230_vm0, %v1215_v26, 0.0 }
 0x2a6   : > { %969 = vpush %v425_v32  ;;  %v447_v36 = vrot.slane %v446_v34, 1  ;;  %v459_v41 = vrot.slane %v458_v35, 1  ;;  %v527_v52 = vrot.slane %v526_v46, 4  ;;  %v538_v55 = vrot.slane %v537_v50, 4  ;;  %v1227_v32 = vld [vmem:[%s1091_s23 + $0x3c] sm:$0xf] }
 0x2a7   : > { %971 = vpush %v436_v33  ;;  %v508_v1 = vrot.slane %v507_v56, 2  ;;  %v518_v48 = vrot.slane %v517_v57, 2  ;;  %v660_v33 = vsel %vm230_vm0, %v1224_v31, 0.0 }
 0x2a8   : > { %v448_v42 = vadd.f32 %v447_v36, %v446_v34  ;;  %v460_v43 = vadd.f32 %v459_v41, %v458_v35  ;;  %v528_v59 = vadd.f32 %v527_v52, %v526_v46  ;;  %v539_v0 = vadd.f32 %v538_v55, %v537_v50 }
 0x2a9   : > { %v509_v54 = vadd.f32 %v508_v1, %v507_v56  ;;  %v519_v4 = vadd.f32 %v518_v48, %v517_v57  ;;  %v671_v34 = vsel %vm230_vm0, %v1227_v32, 0.0 }
 0x2aa   : > { %973 = vpush %v448_v42  ;;  %v529_v2 = vrot.slane %v528_v59, 2  ;;  %v540_v47 = vrot.slane %v539_v0, 2 }
 0x2ab   : > { %975 = vpush %v460_v43  ;;  %v510_v7 = vrot.slane %v509_v54, 1  ;;  %v520_v10 = vrot.slane %v519_v4, 1 }
 0x2ac   : > { %v530_v5 = vadd.f32 %v529_v2, %v528_v59  ;;  %v541_v6 = vadd.f32 %v540_v47, %v539_v0 }
 0x2ad   : > { %v511_v14 = vadd.f32 %v510_v7, %v509_v54  ;;  %v521_v15 = vadd.f32 %v520_v10, %v519_v4 }
 0x2ae   : > { %v531_v11 = vrot.slane %v530_v5, 1  ;;  %v542_v12 = vrot.slane %v541_v6, 1 }
 0x2b0   : > { %v532_v16 = vadd.f32 %v531_v11, %v530_v5  ;;  %v543_v17 = vadd.f32 %v542_v12, %v541_v6  ;;  %v1044_v11 = vmov 0  }
 0x2b1   : > { %1027 = vset.pattern.permute.xlu1 %v1044_v11  ;;  %1026 = vset.pattern.permute.xlu0 %v1044_v11 }
 0x2d7   : > { %s970_s28 = spop %969 }
 0x2d8   : > { %s972_s29 = spop %971 }
 0x2d9   : > { %s438_s30 = sadd.f32 %s972_s29, %s970_s28 }
 0x2db   : > { %s974_s6 = spop %973 }
 0x2dc   : > { %s450_s7 = sadd.f32 %s974_s6, %s438_s30  ;;  %s976_s8 = spop %975 }
 0x2de   : > { %s462_s9 = sadd.f32 %s976_s8, %s450_s7 }
 0x2e0   : > { %s463_s10 = smul.f32 0.0009765625, %s462_s9 }
 0x2e2   : > { %s464_s11 = sadd.f32 1e-05, %s463_s10 }
 0x2e4   : > { %v465_v58 = vstv %s464_s11 }
 0x2e5   : > { %1030 = vrsqrt.f32 %v465_v58 }
 0x2f2   : > { %v1031_v13 = vpop.eup %1030 }
 0x2f3   : > { %977 = vpush %v1031_v13 }
 0x2f4   : > { %979 = vpush %v511_v14 }
 0x2f5   : > { %981 = vpush %v521_v15 }
 0x2f6   : > { %983 = vpush %v532_v16 }
 0x2f7   : > { %985 = vpush %v543_v17 }
 0x324   : > { %s1187_s12 = spop %977 }
 0x325   : > { %s980_s13 = spop %979 }
 0x326   : > { %s982_s14 = spop %981 }
 0x327   : > { %s523_s15 = sadd.f32 %s982_s14, %s980_s13  ;;  %s984_s17 = spop %983 }
 0x328   : > { %s986_s21 = spop %985 }
 0x329   : > { %s534_s20 = sadd.f32 %s984_s17, %s523_s15 }
 0x32b   : > { %s545_s22 = sadd.f32 %s986_s21, %s534_s20 }
 0x32d   : > { %s546_s24 = smul.f32 0.0009765625, %s545_s22 }
 0x32f   : > { %v547_v18 = vstv %s546_s24 }
 0x330   : > { %v1190_v19 = vsub.f32 %v1169_v3, %v547_v18  ;;  %v1193_v20 = vsub.f32 %v1166_v53, %v547_v18  ;;  %v1196_v21 = vsub.f32 %v1181_v9, %v547_v18  ;;  %v1199_v22 = vsub.f32 %v1178_v8, %v547_v18  ;;  %v1212_v8 = vld [vmem:[%s1091_s23 + $0xc] sm:$0xf] }
 0x331   : > { %v639_v29 = vsel %vm230_vm0, %v1212_v8, 0.0 }
 0x332   : > { %v563_v23 = vmul.f32 %v1190_v19, %v1190_v19  ;;  %v552_v24 = vmul.f32 %v1193_v20, %v1193_v20  ;;  %v587_v53 = vmul.f32 %v1196_v21, %v1196_v21  ;;  %v575_v9 = vmul.f32 %v1199_v22, %v1199_v22 }
 0x334   : > { %v564_v3 = vsel %vm230_vm0, %v563_v23, 0.0  ;;  %v553_v25 = vsel %vm230_vm0, %v552_v24, 0.0  ;;  %v588_v27 = vsel %vm230_vm0, %v587_v53, 0.0  ;;  %v576_v28 = vsel %vm230_vm0, %v575_v9, 0.0 }
 0x335   : > { %565 = vadd.xlane.f32.xlu1 %v564_v3  ;;  %554 = vadd.xlane.f32.xlu0 %v553_v25 }
 0x339   : > { %589 = vadd.xlane.f32.xlu1 %v588_v27  ;;  %577 = vadd.xlane.f32.xlu0 %v576_v28 }
 0x33d   : > { %640 = vadd.xlane.f32.xlu0 %v639_v29  ;;  %650 = vadd.xlane.f32.xlu1 %v649_v30 }
 0x341   : > { %661 = vadd.xlane.f32.xlu0 %v660_v33  ;;  %672 = vadd.xlane.f32.xlu1 %v671_v34 }
 0x3be   : > { %v566_v35 = vpop.xlane.xlu1 %565  ;;  %v555_v36 = vpop.xlane.xlu0 %554 }
 0x3bf   : > { %v567_v41 = vrot.slane %v566_v35, 4  ;;  %v556_v42 = vrot.slane %v555_v36, 4 }
 0x3c1   : > { %v568_v43 = vadd.f32 %v567_v41, %v566_v35  ;;  %v557_v44 = vadd.f32 %v556_v42, %v555_v36 }
 0x3c2   : > { %v590_v45 = vpop.xlane.xlu1 %589  ;;  %v578_v46 = vpop.xlane.xlu0 %577 }
 0x3c3   : > { %v569_v49 = vrot.slane %v568_v43, 2  ;;  %v558_v50 = vrot.slane %v557_v44, 2  ;;  %v591_v51 = vrot.slane %v590_v45, 4  ;;  %v579_v52 = vrot.slane %v578_v46, 4 }
 0x3c5   : > { %v592_v55 = vadd.f32 %v591_v51, %v590_v45  ;;  %v580_v56 = vadd.f32 %v579_v52, %v578_v46  ;;  %v559_v57 = vadd.f32 %v558_v50, %v557_v44  ;;  %v570_v58 = vadd.f32 %v569_v49, %v568_v43 }
 0x3c6   : > { %v641_v12 = vpop.xlane.xlu0 %640  ;;  %v651_v13 = vpop.xlane.xlu1 %650 }
 0x3c7   : > { %v593_v59 = vrot.slane %v592_v55, 2  ;;  %v581_v0 = vrot.slane %v580_v56, 2  ;;  %v560_v1 = vrot.slane %v559_v57, 1  ;;  %v571_v48 = vrot.slane %v570_v58, 1 }
 0x3c8   : > { %v642_v15 = vrot.slane %v641_v12, 4  ;;  %v652_v17 = vrot.slane %v651_v13, 4 }
 0x3c9   : > { %v561_v2 = vadd.f32 %v560_v1, %v559_v57  ;;  %v572_v47 = vadd.f32 %v571_v48, %v570_v58  ;;  %v582_v54 = vadd.f32 %v581_v0, %v580_v56  ;;  %v594_v4 = vadd.f32 %v593_v59, %v592_v55 }
 0x3ca   : > { %v662_v14 = vpop.xlane.xlu0 %661  ;;  %v673_v16 = vpop.xlane.xlu1 %672  ;;  %v643_v24 = vadd.f32 %v642_v15, %v641_v12  ;;  %v653_v3 = vadd.f32 %v652_v17, %v651_v13  ;;  %v607_v12 = vld [vmem:[%s1333_s2 + $0x8] sm:$0xf]  ;;  %v743_v13 = vld [vmem:[%s1333_s2 + $0xc] sm:$0xf] }
 0x3cb   : > { %987 = vpush %v561_v2  ;;  %v583_v5 = vrot.slane %v582_v54, 1  ;;  %v595_v6 = vrot.slane %v594_v4, 1  ;;  %v663_v18 = vrot.slane %v662_v14, 4  ;;  %v674_v23 = vrot.slane %v673_v16, 4  ;;  %v332_v2 = vld [vmem:[%s1332_s1] sm:$0xf] }
 0x3cc   : > { %989 = vpush %v572_v47  ;;  %v644_v27 = vrot.slane %v643_v24, 2  ;;  %v654_v28 = vrot.slane %v653_v3, 2  ;;  %v333_v47 = vstv %s1141_s16 }
 0x3cd   : > { %v584_v7 = vadd.f32 %v583_v5, %v582_v54  ;;  %v596_v10 = vadd.f32 %v595_v6, %v594_v4  ;;  %v664_v53 = vadd.f32 %v663_v18, %v662_v14  ;;  %v675_v9 = vadd.f32 %v674_v23, %v673_v16  ;;  %v468_v4 = vld [vmem:[%s1332_s1 + $0x4] sm:$0xf]  ;;  %v604_v6 = vld [vmem:[%s1332_s1 + $0x8] sm:$0xf]  ;;  %v335_v14 = vld [vmem:[%s1333_s2] sm:$0xf] }
 0x3ce   : > { %v645_v33 = vadd.f32 %v644_v27, %v643_v24  ;;  %v655_v34 = vadd.f32 %v654_v28, %v653_v3  ;;  %v334_v54 = vmul.f32 %v333_v47, %v332_v2  ;;  %v469_v5 = vstv %s1187_s12 }
 0x3cf   : > { %991 = vpush %v584_v7  ;;  %v665_v29 = vrot.slane %v664_v53, 2  ;;  %v676_v30 = vrot.slane %v675_v9, 2 }
 0x3d0   : > { %993 = vpush %v596_v10  ;;  %v646_v41 = vrot.slane %v645_v33, 1  ;;  %v656_v42 = vrot.slane %v655_v34, 1  ;;  %v470_v10 = vmul.f32 %v469_v5, %v468_v4 }
 0x3d1   : > { %v666_v35 = vadd.f32 %v665_v29, %v664_v53  ;;  %v677_v36 = vadd.f32 %v676_v30, %v675_v9 }
 0x3d2   : > { %v647_v46 = vadd.f32 %v646_v41, %v645_v33  ;;  %v657_v49 = vadd.f32 %v656_v42, %v655_v34 }
 0x3d3   : > { %v667_v43 = vrot.slane %v666_v35, 1  ;;  %v678_v44 = vrot.slane %v677_v36, 1 }
 0x3d5   : > { %v668_v50 = vadd.f32 %v667_v43, %v666_v35  ;;  %v679_v51 = vadd.f32 %v678_v44, %v677_v36 }
 0x3fc   : > { %s988_s23 = spop %987 }
 0x3fd   : > { %s990_s25 = spop %989 }
 0x3fe   : > { %s574_s26 = sadd.f32 %s990_s25, %s988_s23 }
 0x400   : > { %s992_s27 = spop %991 }
 0x401   : > { %s586_s28 = sadd.f32 %s992_s27, %s574_s26  ;;  %s994_s29 = spop %993 }
 0x403   : > { %s598_s30 = sadd.f32 %s994_s29, %s586_s28  ;;  %s916_s28 = sshll.u32 %s1338_s19, 3 }
 0x404   : > { %s222_s12 = scalar_lea.vmem %s1336_s5, %s916_s28 }
 0x405   : > { %s599_s6 = smul.f32 0.0009765625, %s598_s30 }
 0x407   : > { %s600_s7 = sadd.f32 1e-05, %s599_s6 }
 0x409   : > { %v601_v25 = vstv %s600_s7 }
 0x40a   : > { %1032 = vrsqrt.f32 %v601_v25 }
 0x417   : > { %v1033_v45 = vpop.eup %1032 }
 0x418   : > { %995 = vpush %v1033_v45 }
 0x419   : > { %997 = vpush %v647_v46 }
 0x41a   : > { %999 = vpush %v657_v49 }
 0x41b   : > { %1001 = vpush %v668_v50 }
 0x41c   : > { %1003 = vpush %v679_v51 }
 0x449   : > { %s1233_s8 = spop %995 }
 0x44a   : > { %s998_s9 = spop %997  ;;  %v605_v7 = vstv %s1233_s8 }
 0x44b   : > { %s1000_s10 = spop %999  ;;  %v606_v11 = vmul.f32 %v605_v7, %v604_v6 }
 0x44c   : > { %s659_s11 = sadd.f32 %s1000_s10, %s998_s9  ;;  %s1002_s13 = spop %1001 }
 0x44d   : > { %s1004_s15 = spop %1003 }
 0x44e   : > { %s670_s14 = sadd.f32 %s1002_s13, %s659_s11 }
 0x450   : > { %s681_s17 = sadd.f32 %s1004_s15, %s670_s14 }
 0x452   : > { %s682_s20 = smul.f32 0.0009765625, %s681_s17 }
 0x454   : > { %v683_v52 = vstv %s682_s20 }
 0x455   : > { %v1236_v55 = vsub.f32 %v1215_v26, %v683_v52  ;;  %v1239_v56 = vsub.f32 %v1212_v8, %v683_v52  ;;  %v1242_v57 = vsub.f32 %v1227_v32, %v683_v52  ;;  %v1245_v58 = vsub.f32 %v1224_v31, %v683_v52 }
 0x457   : > { %v699_v59 = vmul.f32 %v1236_v55, %v1236_v55  ;;  %v688_v0 = vmul.f32 %v1239_v56, %v1239_v56  ;;  %v723_v1 = vmul.f32 %v1242_v57, %v1242_v57  ;;  %v711_v32 = vmul.f32 %v1245_v58, %v1245_v58 }
 0x459   : > { %v700_v26 = vsel %vm230_vm0, %v699_v59, 0.0  ;;  %v689_v8 = vsel %vm230_vm0, %v688_v0, 0.0  ;;  %v724_v31 = vsel %vm230_vm0, %v723_v1, 0.0  ;;  %v712_v48 = vsel %vm230_vm0, %v711_v32, 0.0 }
 0x45a   : > { %701 = vadd.xlane.f32.xlu1 %v700_v26  ;;  %690 = vadd.xlane.f32.xlu0 %v689_v8 }
 0x45e   : > { %725 = vadd.xlane.f32.xlu1 %v724_v31  ;;  %713 = vadd.xlane.f32.xlu0 %v712_v48 }
 0x46f   : > { %338 = vperm.xlu1 %1027, %v334_v54  }
 0x473   : > { %474 = vperm.xlu1 %1027, %v470_v10  }
 0x474   : > { %610 = vperm.xlu0 %1026, %v606_v11  }
 0x477   : > { %616 = vperm.xlu1 %1027, %v607_v12  }
 0x47b   : > { %752 = vperm.xlu1 %1027, %v743_v13  }
 0x47f   : > { %344 = vperm.xlu1 %1027, %v335_v14  }
 0x4e3   : > { %v702_v15 = vpop.xlane.xlu1 %701  ;;  %v691_v16 = vpop.xlane.xlu0 %690 }
 0x4e4   : > { %v703_v17 = vrot.slane %v702_v15, 4  ;;  %v692_v18 = vrot.slane %v691_v16, 4 }
 0x4e6   : > { %v704_v23 = vadd.f32 %v703_v17, %v702_v15  ;;  %v693_v24 = vadd.f32 %v692_v18, %v691_v16 }
 0x4e7   : > { %v726_v3 = vpop.xlane.xlu1 %725  ;;  %v714_v25 = vpop.xlane.xlu0 %713 }
 0x4e8   : > { %v705_v53 = vrot.slane %v704_v23, 2  ;;  %v694_v9 = vrot.slane %v693_v24, 2  ;;  %v727_v27 = vrot.slane %v726_v3, 4  ;;  %v715_v28 = vrot.slane %v714_v25, 4 }
 0x4ea   : > { %v728_v29 = vadd.f32 %v727_v27, %v726_v3  ;;  %v716_v30 = vadd.f32 %v715_v28, %v714_v25  ;;  %v695_v33 = vadd.f32 %v694_v9, %v693_v24  ;;  %v706_v34 = vadd.f32 %v705_v53, %v704_v23 }
 0x4eb   : > { %v339_v35 = vpop.permute.xlu1 %338 }
 0x4ec   : > { %v729_v36 = vrot.slane %v728_v29, 2  ;;  %v717_v41 = vrot.slane %v716_v30, 2  ;;  %v696_v42 = vrot.slane %v695_v33, 1  ;;  %v707_v43 = vrot.slane %v706_v34, 1 }
 0x4ed   : > { %v349_v10 = vmul.f32 %v339_v35, %v1101_v37  ;;  %v355_v13 = vmul.f32 %v339_v35, %v1105_v39 }
 0x4ee   : > { %v718_v44 = vadd.f32 %v717_v41, %v716_v30  ;;  %v730_v45 = vadd.f32 %v729_v36, %v728_v29  ;;  %v697_v50 = vadd.f32 %v696_v42, %v695_v33  ;;  %v708_v51 = vadd.f32 %v707_v43, %v706_v34  ;;  %v740_v29 = vld [vmem:[%s1332_s1 + $0xc] sm:$0xf]  ;;  %v471_v34 = vld [vmem:[%s1333_s2 + $0x4] sm:$0xf] }
 0x4ef   : > { %v1280_v46 = vpop.permute.xlu1 %474  ;;  %v611_v49 = vpop.permute.xlu0 %610  ;;  %v1045_v36 = vmov 0.0  }
 0x4f0   : > { %v613_v52 = vmul.f32 %v611_v49, %v1193_v20  ;;  %1005 = vpush %v697_v50  ;;  %v621_v59 = vmul.f32 %v611_v49, %v1190_v19  ;;  %v624_v0 = vmul.f32 %v611_v49, %v1199_v22  ;;  %v719_v26 = vrot.slane %v718_v44, 1  ;;  %936 = vmatprep.subr.mxu0 %v1045_v36 }
 0x4f1   : > { %1007 = vpush %v708_v51  ;;  %v731_v8 = vrot.slane %v730_v45, 1  ;;  %v627_v32 = vmul.f32 %v611_v49, %v1196_v21  ;;  %v341_v22 = vmul.f32 %v339_v35, %v1103_v38  ;;  %v352_v21 = vmul.f32 %v339_v35, %v1107_v40  ;;  %v774_v35 = vld [vmem:[%s1335_s4] sm:$0xff]  ;;  %940 = vmatprep.mubr.msk.f32.mxu0 %vm1046_vm1, %v1045_v36 }
 0x4f2   : > { %v720_v47 = vadd.f32 %v719_v26, %v718_v44  ;;  %v491_v26 = vmul.f32 %v1280_v46, %v1150_v62 }
 0x4f3   : > { %v617_v1 = vpop.permute.xlu1 %616  ;;  %v732_v54 = vadd.f32 %v731_v8, %v730_v45 }
 0x4f4   : > { %v619_v31 = vadd.f32 %v617_v1, %v613_v52  ;;  %v622_v48 = vadd.f32 %v621_v59, %v617_v1  ;;  %v625_v2 = vadd.f32 %v624_v0, %v617_v1  ;;  %v628_v6 = vadd.f32 %v627_v32, %v617_v1  ;;  %1009 = vpush %v720_v47 }
 0x4f5   : > { %1011 = vpush %v732_v54  ;;  %v477_v52 = vmul.f32 %v1280_v46, %v1147_v61  ;;  %v485_v59 = vmul.f32 %v1280_v46, %v1144_v60 }
 0x4f6   : > { %v620_v4 = vmax.f32 %v619_v31, 0.0  ;;  %v623_v5 = vmax.f32 %v622_v48, 0.0  ;;  %v626_v19 = vmax.f32 %v625_v2, 0.0  ;;  %v629_v11 = vmax.f32 %v628_v6, 0.0 }
 0x4f7   : > { %v1286_v20 = vpop.permute.xlu1 %752 }
 0x4f8   : > { %v630_v7 = vadd.f32 %v623_v5, %v620_v4 }
 0x4fa   : > { %v631_v12 = vadd.f32 %v630_v7, %v626_v19 }
 0x4fb   : > { %v345_v14 = vpop.permute.xlu1 %344 }
 0x4fc   : > { %v632_v15 = vadd.f32 %v631_v12, %v629_v11  ;;  %v347_v16 = vadd.f32 %v345_v14, %v341_v22  ;;  %v350_v17 = vadd.f32 %v349_v10, %v345_v14  ;;  %v353_v18 = vadd.f32 %v352_v21, %v345_v14  ;;  %v771_v22 = vld [vmem:[%s1334_s3] sm:$0xff] }
 0x4fd   : > { %v356_v25 = vadd.f32 %v355_v13, %v345_v14 }
 0x4fe   : > { %v633_v23 = vmul.f32 0.25, %v632_v15  ;;  %v348_v24 = vmax.f32 %v347_v16, 0.0  ;;  %v351_v3 = vmax.f32 %v350_v17, 0.0  ;;  %v354_v38 = vmax.f32 %v353_v18, 0.0 }
 0x4ff   : > { %v357_v37 = vmax.f32 %v356_v25, 0.0 }
 0x500   : > { %634 = vst.msk [vmem:[#allocation2 + $0x8] sm:$0xf] %vm230_vm0, %v633_v23  ;;  %v358_v53 = vadd.f32 %v351_v3, %v348_v24 }
 0x502   : > { %v359_v9 = vadd.f32 %v358_v53, %v354_v38 }
 0x504   : > { %v360_v40 = vadd.f32 %v359_v9, %v357_v37 }
 0x506   : > { %v361_v27 = vmul.f32 0.25, %v360_v40 }
 0x508   : > { %362 = vst.msk [vmem:[#allocation2] sm:$0xf] %vm230_vm0, %v361_v27 }
 0x521   : > { %s1006_s6 = spop %1005 }
 0x522   : > { %s1008_s7 = spop %1007 }
 0x523   : > { %s710_s8 = sadd.f32 %s1008_s7, %s1006_s6 }
 0x525   : > { %s1010_s9 = spop %1009 }
 0x526   : > { %s722_s10 = sadd.f32 %s1010_s9, %s710_s8  ;;  %s1012_s11 = spop %1011 }
 0x528   : > { %s734_s13 = sadd.f32 %s1012_s11, %s722_s10 }
 0x52a   : > { %s735_s14 = smul.f32 0.0009765625, %s734_s13 }
 0x52c   : > { %s736_s15 = sadd.f32 1e-05, %s735_s14 }
 0x52e   : > { %v737_v39 = vstv %s736_s15 }
 0x52f   : > { %1034 = vrsqrt.f32 %v737_v39 }
 0x53c   : > { %v1035_v28 = vpop.eup %1034 }
 0x53d   : > { %1013 = vpush %v1035_v28 }
 0x56e   : > { %s1014_s21 = spop %1013 }
 0x56f   : > { %v741_v30 = vstv %s1014_s21 }
 0x570   : > { %v742_v33 = vmul.f32 %v741_v30, %v740_v29 }
 0x572   : > { %746 = vperm.xlu1 %1027, %v742_v33  }
 0x576   : > { %480 = vperm.xlu1 %1027, %v471_v34  }
 0x57a   : > { %777 = vperm.xlu1 %1027, %v774_v35  }
 0x5ed   : > { %v747_v41 = vpop.permute.xlu1 %746 }
 0x5ee   : > { %v749_v42 = vmul.f32 %v747_v41, %v1239_v56  ;;  %v757_v43 = vmul.f32 %v747_v41, %v1236_v55  ;;  %v760_v44 = vmul.f32 %v747_v41, %v1245_v58  ;;  %v763_v45 = vmul.f32 %v747_v41, %v1242_v57 }
 0x5ef   : > { %v488_v56 = vmul.f32 %v1280_v46, %v1153_v63 }
 0x5f0   : > { %v755_v49 = vadd.f32 %v1286_v20, %v749_v42  ;;  %v758_v50 = vadd.f32 %v757_v43, %v1286_v20  ;;  %v761_v51 = vadd.f32 %v760_v44, %v1286_v20  ;;  %v764_v57 = vadd.f32 %v763_v45, %v1286_v20 }
 0x5f1   : > { %v481_v55 = vpop.permute.xlu1 %480 }
 0x5f2   : > { %v756_v0 = vmax.f32 %v755_v49, 0.0  ;;  %v759_v58 = vmax.f32 %v758_v50, 0.0  ;;  %v483_v8 = vadd.f32 %v481_v55, %v477_v52  ;;  %v486_v1 = vadd.f32 %v485_v59, %v481_v55 }
 0x5f3   : > { %v489_v32 = vadd.f32 %v488_v56, %v481_v55  ;;  %v762_v31 = vmax.f32 %v761_v51, 0.0  ;;  %v492_v47 = vadd.f32 %v491_v26, %v481_v55  ;;  %v765_v60 = vmax.f32 %v764_v57, 0.0 }
 0x5f4   : > { %v766_v48 = vadd.f32 %v759_v58, %v756_v0  ;;  %v484_v61 = vmax.f32 %v483_v8, 0.0  ;;  %v487_v2 = vmax.f32 %v486_v1, 0.0 }
 0x5f5   : > { %v490_v4 = vmax.f32 %v489_v32, 0.0  ;;  %v493_v6 = vmax.f32 %v492_v47, 0.0  ;;  %v778_v21 = vpop.permute.xlu1 %777 }
 0x5f6   : > { %v767_v54 = vadd.f32 %v766_v48, %v762_v31  ;;  %v494_v63 = vadd.f32 %v487_v2, %v484_v61 }
 0x5f8   : > { %v768_v5 = vadd.f32 %v767_v54, %v765_v60  ;;  %v495_v19 = vadd.f32 %v494_v63, %v490_v4 }
 0x5fa   : > { %v769_v20 = vmul.f32 0.25, %v768_v5  ;;  %v496_v7 = vadd.f32 %v495_v19, %v493_v6 }
 0x5fc   : > { %770 = vst.msk [vmem:[#allocation2 + $0xc] sm:$0xf] %vm230_vm0, %v769_v20  ;;  %v497_v62 = vmul.f32 0.25, %v496_v7 }
 0x5fe   : > { %498 = vst.msk [vmem:[#allocation2 + $0x4] sm:$0xf] %vm230_vm0, %v497_v62 }
 0x603   : > { %v773_v46 = vld [vmem:[#allocation2 + $0x8] sm:$0xff] }
 0x604   : > { %937 = vmatpush3.msra.mxu0 %v773_v46 }
 0x605   : > { %938 = vmatprep.subr.mxu0 %v1045_v36  ;;  %v772_v10 = vld [vmem:[#allocation2] sm:$0xff] }
 0x606   : > { %939 = vmatpush3.msra.mxu0 %v772_v10 }
 0x607   : > { %941 = vmatmul.mubr.msk.f32.vlgmr.msra.gmra.mxu0 %vm780_vm2, %v771_v22 }
 0x6c7   : > { %v850_v11 = vpop.f32.mrf.mxu0 }
 0x6c8   : > { %v851_v12 = vadd.f32 %v850_v11, %v778_v21 }
 0x6c9   : > { %v942_v13 = vpop.f32.mrf.mxu0 }
 0x6ca   : > { %855 = vst.msk [vmem:[%s222_s12] sm:$0xff] %vm854_vm3, %v851_v12 }
 0x6cb PF: > { %s15_s18 = sadd.s32 1, %s1042_s18  }
 0x6cc   : > { %p12_p4 = scmp.ge.s32.totalorder %s15_s18, 4  }
 0x6ce   :  { %14 = sbr.rel (!%p12_p4) target bundleno = 1 (0x1), region = 73 }

</bundles_post_ra>
